<compile_context>
chip_gen: v6e
topology: v6e:2x2x1
jax: 0.10.0
libtpu: 0.0.40
codegen_flags: <defaults>
</compile_context>

<pallas_src>
import functools

import jax
import jax.numpy as jnp
from jax.experimental import pallas as pl
from jax.experimental.pallas import tpu as pltpu

LANE = 128  # layer-3 weight columns padded to this for a clean MXU N-tile


def _mlp_kernel(x_ref, w1_ref, b1_ref, w2_ref, b2_ref, w3_ref, b3_ref, o_ref):
    # GradientReversal is the identity in the forward pass.
    # TODO(synk): gradient reversal (negated, alpha-scaled backward) needs a
    # jax.custom_vjp wrapper around this kernel; only forward semantics here.
    x = x_ref[...].astype(jnp.bfloat16)                    # in-kernel VPU cast

    # Layer 1: Linear(F -> 768) + ReLU, f32 accumulation on the MXU.
    h1 = jnp.dot(x, w1_ref[...], preferred_element_type=jnp.float32)
    h1 = jnp.maximum(h1 + b1_ref[...], 0.0).astype(jnp.bfloat16)

    # Layer 2: Linear(768 -> 256) + ReLU.
    h2 = jnp.dot(h1, w2_ref[...], preferred_element_type=jnp.float32)
    h2 = jnp.maximum(h2 + b2_ref[...], 0.0).astype(jnp.bfloat16)

    # Layer 3: Linear(256 -> 128 padded); store only the real logit columns.
    logits = jnp.dot(h2, w3_ref[...], preferred_element_type=jnp.float32)
    logits = logits + b3_ref[...]
    n_out = o_ref.shape[1]
    o_ref[...] = logits[:, :n_out].astype(o_ref.dtype)


def _round_up(n, m):
    return ((n + m - 1) // m) * m


def prepare_params(params):
    """Cast weights to bf16, keep biases f32, zero-pad layer-3 weights/bias to
    128 columns (matmul only; the kernel output is unpadded)."""
    w1, b1, w2, b2, w3, b3 = params
    n_out = w3.shape[1]
    w3p = jnp.zeros((w3.shape[0], LANE), w3.dtype).at[:, :n_out].set(w3)
    b3p = jnp.zeros((1, LANE), b3.dtype).at[:, :n_out].set(b3)
    return (w1.astype(jnp.bfloat16), b1.astype(jnp.float32),
            w2.astype(jnp.bfloat16), b2.astype(jnp.float32),
            w3p.astype(jnp.bfloat16), b3p.astype(jnp.float32)), n_out


def _pick_tile(B):
    # Large tiles (up to 1024 rows, multiple of 256) amortize per-step
    # overhead; cap at ceil(B/2) rounded to 256 so medium/large batches give
    # >= 2 grid steps (lets "parallel" shard across v7x's two TensorCores).
    tb = min(1024, _round_up(pl.cdiv(B, 2), 256))
    # Tiny batches: single 8-row-aligned tile (don't DMA a padded 256-row blk).
    tb = min(tb, _round_up(B, 8))
    return tb


@functools.partial(jax.jit, static_argnames=("n_out", "tb"))
def subject_discriminator_forward(x, prepped, n_out=2, tb=None):
    """Fused 3-layer MLP forward. x: (B, F) f32/bf16; returns (B, n_out) f32.

    TODO(synk): for repeated tiny-batch calls this is weight-DMA/launch bound;
    keep weights resident across calls or quantize them (int8 on v5e/v6e, fp8
    on v6e/v7x) at the calling-convention level.
    """
    w1, b1, w2, b2, w3, b3 = prepped
    B, F = x.shape

    if tb is None:
        tb = _pick_tile(B)
    grid = (pl.cdiv(B, tb),)

    # Weights/biases: constant index_map -> resident in VMEM across all steps.
    resident = lambda a: pl.BlockSpec(a.shape, lambda i: (0,) * a.ndim)

    flops = 2 * B * (F * w1.shape[1]
                     + w2.shape[0] * w2.shape[1]
                     + w3.shape[0] * w3.shape[1])
    bytes_accessed = (x.size * x.dtype.itemsize            # f32 (or bf16) x
                      + B * n_out * 4                      # unpadded f32 logits
                      + sum(a.size * a.dtype.itemsize for a in prepped))

    out = pl.pallas_call(
        _mlp_kernel,
        out_shape=jax.ShapeDtypeStruct((B, n_out), jnp.float32),
        grid=grid,
        in_specs=[
            pl.BlockSpec((tb, F), lambda i: (i, 0)),       # streamed activations
            resident(w1), resident(b1),
            resident(w2), resident(b2),
            resident(w3), resident(b3),
        ],
        out_specs=pl.BlockSpec((tb, n_out), lambda i: (i, 0)),
        compiler_params=pltpu.CompilerParams(
            dimension_semantics=("parallel",)),
        cost_estimate=pl.CostEstimate(
            flops=flops, transcendentals=0, bytes_accessed=bytes_accessed),
    )(x, w1, b1, w2, b2, w3, b3)

    return out


def init_params(key, features_dim=768):
    """Deterministic init mimicking PyTorch nn.Linear (uniform +/- 1/sqrt(fan_in)).
    Weights are stored as (in_features, out_features)."""
    dims = [(features_dim, 768), (768, 256), (256, 2)]
    params = []
    for (fan_in, fan_out) in dims:
        key, kw, kb = jax.random.split(key, 3)
        bound = 1.0 / jnp.sqrt(jnp.float32(fan_in))
        w = jax.random.uniform(kw, (fan_in, fan_out), jnp.float32, -bound, bound)
        b = jax.random.uniform(kb, (1, fan_out), jnp.float32, -bound, bound)
        params.extend([w, b])
    return tuple(params)


def reference_forward(x, params):
    w1, b1, w2, b2, w3, b3 = params
    h1 = jnp.maximum(x @ w1 + b1, 0.0)
    h2 = jnp.maximum(h1 @ w2 + b2, 0.0)
    return h2 @ w3 + b3


if __name__ == "__main__":
    key = jax.random.PRNGKey(0)
    features_dim = 768
    params = init_params(key, features_dim)
    prepped, n_out = prepare_params(params)

    # Case 1: tiny batch (single small tile, weight-DMA bound path).
    # Case 2: medium batch (2 grid steps, partial final tile, megacore path).
    for batch in (8, 384):
        key, kx = jax.random.split(key)
        x = jax.random.normal(kx, (batch, features_dim), jnp.float32)

        out = subject_discriminator_forward(x, prepped, n_out=n_out)
        out = jax.block_until_ready(out)

        ref = reference_forward(x, params)
        assert out.shape == (batch, n_out), out.shape
        # bf16 weights/activations (f32 accumulation) -> loosened tolerance
        # vs. the all-f32 PyTorch reference.
        max_err = float(jnp.max(jnp.abs(out - ref)))
        assert jnp.allclose(out, ref, atol=5e-2, rtol=5e-2), max_err

    print("KERNEL_OK")
</pallas_src>

<mosaic_0001>
module attributes {stable_mosaic.version = 11 : i64} {
  func.func @_mlp_kernel(%arg0: i32, %arg1: memref<8x768xf32, #tpu.memory_space<vmem>>, %arg2: memref<768x768xbf16, #tpu.memory_space<vmem>>, %arg3: memref<1x768xf32, #tpu.memory_space<vmem>>, %arg4: memref<768x256xbf16, #tpu.memory_space<vmem>>, %arg5: memref<1x256xf32, #tpu.memory_space<vmem>>, %arg6: memref<256x128xbf16, #tpu.memory_space<vmem>>, %arg7: memref<1x128xf32, #tpu.memory_space<vmem>>, %arg8: memref<8x2xf32, #tpu.memory_space<vmem>>) attributes {dimension_semantics = [#tpu.dimension_semantics<parallel>], iteration_bounds = array<i64: 1>, scalar_prefetch = 0 : i64, scratch_operands = 0 : i64, tpu.core_type = #tpu.core_type<tc>, window_params = [{transform_indices = @transform_0, window_bounds = array<i64: 8, 768>}, {pipeline_mode = #tpu.pipeline_mode<synchronous>, transform_indices = @transform_1, window_bounds = array<i64: 768, 768>}, {pipeline_mode = #tpu.pipeline_mode<synchronous>, transform_indices = @transform_2, window_bounds = array<i64: 1, 768>}, {pipeline_mode = #tpu.pipeline_mode<synchronous>, transform_indices = @transform_3, window_bounds = array<i64: 768, 256>}, {pipeline_mode = #tpu.pipeline_mode<synchronous>, transform_indices = @transform_4, window_bounds = array<i64: 1, 256>}, {pipeline_mode = #tpu.pipeline_mode<synchronous>, transform_indices = @transform_5, window_bounds = array<i64: 256, 128>}, {pipeline_mode = #tpu.pipeline_mode<synchronous>, transform_indices = @transform_6, window_bounds = array<i64: 1, 128>}, {transform_indices = @transform_7, window_bounds = array<i64: 8, 2>}]} {
    %c0 = arith.constant 0 : index
    %c0_0 = arith.constant 0 : index
    %0 = vector.load %arg1[%c0, %c0_0] : memref<8x768xf32, #tpu.memory_space<vmem>>, vector<8x768xf32>
    %1 = arith.truncf %0 : vector<8x768xf32> to vector<8x768xbf16>
    %c0_1 = arith.constant 0 : index
    %c0_2 = arith.constant 0 : index
    %2 = vector.load %arg2[%c0_1, %c0_2] : memref<768x768xbf16, #tpu.memory_space<vmem>>, vector<768x768xbf16>
    %cst = arith.constant dense<0.000000e+00> : vector<8x768xf32>
    %3 = tpu.matmul %1, %2, %cst {dimension_numbers = #tpu.dot_dimension_numbers<[1], [0], [0], [1], [0, 0, 1, 1], [], []>} : vector<8x768xbf16>, vector<768x768xbf16>, vector<8x768xf32> -> vector<8x768xf32>
    %c0_3 = arith.constant 0 : index
    %c0_4 = arith.constant 0 : index
    %4 = vector.load %arg3[%c0_3, %c0_4] : memref<1x768xf32, #tpu.memory_space<vmem>>, vector<1x768xf32>
    %5 = vector.broadcast %4 : vector<1x768xf32> to vector<8x768xf32>
    %6 = arith.addf %3, %5 : vector<8x768xf32>
    %cst_5 = arith.constant 0.000000e+00 : f32
    %7 = vector.broadcast %cst_5 : f32 to vector<8x768xf32>
    %8 = arith.maximumf %6, %7 : vector<8x768xf32>
    %9 = arith.truncf %8 : vector<8x768xf32> to vector<8x768xbf16>
    %c0_6 = arith.constant 0 : index
    %c0_7 = arith.constant 0 : index
    %10 = vector.load %arg4[%c0_6, %c0_7] : memref<768x256xbf16, #tpu.memory_space<vmem>>, vector<768x256xbf16>
    %cst_8 = arith.constant dense<0.000000e+00> : vector<8x256xf32>
    %11 = tpu.matmul %9, %10, %cst_8 {dimension_numbers = #tpu.dot_dimension_numbers<[1], [0], [0], [1], [0, 0, 1, 1], [], []>} : vector<8x768xbf16>, vector<768x256xbf16>, vector<8x256xf32> -> vector<8x256xf32>
    %c0_9 = arith.constant 0 : index
    %c0_10 = arith.constant 0 : index
    %12 = vector.load %arg5[%c0_9, %c0_10] : memref<1x256xf32, #tpu.memory_space<vmem>>, vector<1x256xf32>
    %13 = vector.broadcast %12 : vector<1x256xf32> to vector<8x256xf32>
    %14 = arith.addf %11, %13 : vector<8x256xf32>
    %cst_11 = arith.constant 0.000000e+00 : f32
    %15 = vector.broadcast %cst_11 : f32 to vector<8x256xf32>
    %16 = arith.maximumf %14, %15 : vector<8x256xf32>
    %17 = arith.truncf %16 : vector<8x256xf32> to vector<8x256xbf16>
    %c0_12 = arith.constant 0 : index
    %c0_13 = arith.constant 0 : index
    %18 = vector.load %arg6[%c0_12, %c0_13] : memref<256x128xbf16, #tpu.memory_space<vmem>>, vector<256x128xbf16>
    %cst_14 = arith.constant dense<0.000000e+00> : vector<8x128xf32>
    %19 = tpu.matmul %17, %18, %cst_14 {dimension_numbers = #tpu.dot_dimension_numbers<[1], [0], [0], [1], [0, 0, 1, 1], [], []>} : vector<8x256xbf16>, vector<256x128xbf16>, vector<8x128xf32> -> vector<8x128xf32>
    %c0_15 = arith.constant 0 : index
    %c0_16 = arith.constant 0 : index
    %20 = vector.load %arg7[%c0_15, %c0_16] : memref<1x128xf32, #tpu.memory_space<vmem>>, vector<1x128xf32>
    %21 = vector.broadcast %20 : vector<1x128xf32> to vector<8x128xf32>
    %22 = arith.addf %19, %21 : vector<8x128xf32>
    %23 = vector.extract_strided_slice %22 {offsets = [0, 0], sizes = [8, 2], strides = [1, 1]} : vector<8x128xf32> to vector<8x2xf32>
    %c0_17 = arith.constant 0 : index
    %c0_18 = arith.constant 0 : index
    %24 = vector.load %arg8[%c0_17, %c0_18] : memref<8x2xf32, #tpu.memory_space<vmem>>, vector<8x2xf32>
    tpu.vector_store %arg8[%c0_17, %c0_18], %23 {strides = array<i32>} : memref<8x2xf32, #tpu.memory_space<vmem>>, vector<8x2xf32>,
    return
  }
  func.func @transform_0(%arg0: i32) -> (i32, i32) {
    %c0_i32 = arith.constant 0 : i32
    %c0_i32_0 = arith.constant 0 : i32
    return %arg0, %c0_i32 : i32, i32
  }
  func.func @transform_1(%arg0: i32) -> (i32, i32) {
    %c0_i32 = arith.constant 0 : i32
    %c0_i32_0 = arith.constant 0 : i32
    %c0_i32_1 = arith.constant 0 : i32
    return %c0_i32, %c0_i32_0 : i32, i32
  }
  func.func @transform_2(%arg0: i32) -> (i32, i32) {
    %c0_i32 = arith.constant 0 : i32
    %c0_i32_0 = arith.constant 0 : i32
    %c0_i32_1 = arith.constant 0 : i32
    return %c0_i32, %c0_i32_0 : i32, i32
  }
  func.func @transform_3(%arg0: i32) -> (i32, i32) {
    %c0_i32 = arith.constant 0 : i32
    %c0_i32_0 = arith.constant 0 : i32
    %c0_i32_1 = arith.constant 0 : i32
    return %c0_i32, %c0_i32_0 : i32, i32
  }
  func.func @transform_4(%arg0: i32) -> (i32, i32) {
    %c0_i32 = arith.constant 0 : i32
    %c0_i32_0 = arith.constant 0 : i32
    %c0_i32_1 = arith.constant 0 : i32
    return %c0_i32, %c0_i32_0 : i32, i32
  }
  func.func @transform_5(%arg0: i32) -> (i32, i32) {
    %c0_i32 = arith.constant 0 : i32
    %c0_i32_0 = arith.constant 0 : i32
    %c0_i32_1 = arith.constant 0 : i32
    return %c0_i32, %c0_i32_0 : i32, i32
  }
  func.func @transform_6(%arg0: i32) -> (i32, i32) {
    %c0_i32 = arith.constant 0 : i32
    %c0_i32_0 = arith.constant 0 : i32
    %c0_i32_1 = arith.constant 0 : i32
    return %c0_i32, %c0_i32_0 : i32, i32
  }
  func.func @transform_7(%arg0: i32) -> (i32, i32) {
    %c0_i32 = arith.constant 0 : i32
    %c0_i32_0 = arith.constant 0 : i32
    return %arg0, %c0_i32 : i32, i32
  }
}

</mosaic_0001>

<bundles_post_ra>
// kernel: subject_discriminator_forward.1
= control target key start
LH: loop header
LB: loop body
LE: loop exit
PB: predicated region body
PF: predicated region fallthrough
CT: control target
= control target key end

     0   :  { %12 = vsyncpa [#allocation3], 0  ;;  %s4492_s0 = inlined_call_operand.hbm [shape: f32[8,768], index: 0, kind: input, shape index: {}]   ;;  %s4493_s1 = inlined_call_operand.hbm [shape: bf16[768,768], index: 1, kind: input, shape index: {}]   ;;  %s4494_s2 = inlined_call_operand.hbm [shape: f32[1,768], index: 2, kind: input, shape index: {}]   ;;  %s4495_s3 = inlined_call_operand.hbm [shape: bf16[768,256], index: 3, kind: input, shape index: {}]   ;;  %s4496_s4 = inlined_call_operand.hbm [shape: f32[1,256], index: 4, kind: input, shape index: {}]   ;;  %s4497_s5 = inlined_call_operand.hbm [shape: bf16[256,128], index: 5, kind: input, shape index: {}]   ;;  %s4498_s6 = inlined_call_operand.hbm [shape: f32[1,128], index: 6, kind: input, shape index: {}]   ;;  %s4499_s7 = inlined_call_operand.vmem [shape: f32[8,2], index: 7, kind: output, shape index: {}]  }
   0x1   :  { %13 = vsyncpa [#allocation5], 0 }
   0x2   :  { %14 = vsyncpa [#allocation8], 0 }
   0x3   :  { %15 = vsyncpa [#allocation11], 0  ;;  %s4343_s24 = smov [#allocation4]  }
   0x4   :  { %s31_s25 = sshll.u32 %s4343_s24, 4  ;;  %s32_s25 = int_to_ptr.vmem [resolvable:$true] %s31_s25 }
   0x5   :  { %s4203_s26 = scalar_lea.vmem %s32_s25, 36864  ;;  %p4208_p1 = scmp.lt.s32.totalorder %s32_s25, %s32_s25 }
   0x6   :  { %p4204_p0 = scmp.ne.s32.totalorder %s32_s25, %s4203_s26  ;;  %p4209_p2 = scmp.lt.s32.totalorder %s4203_s26, %s4203_s26 }
   0x8   :  { %p4210_p3 = por %p4209_p2, %p4208_p1 }
   0xa   :  { %p4211_p4 = pnand %p4210_p3, %p4204_p0 }
   0xc   :  { %4214 = shalt.err (!%p4211_p4)
}
   0xd   :  { %s4344_s27 = smov 384   ;;  %s4345_s28 = smov 24  }
   0xe   :  { %37 = dma.hbm_to_vmem [thread:$0]  %s4493_s1, 36864, %s32_s25, [#allocation5], %s4344_s27, %s4344_s27, %s4345_s28  }
   0xf   :  { %s4346_s8 = smov [#allocation7]  }
  0x10   :  { %s53_s9 = sshll.u32 %s4346_s8, 4  ;;  %s54_s9 = int_to_ptr.vmem [resolvable:$true] %s53_s9 }
  0x11   :  { %s4223_s10 = scalar_lea.vmem %s54_s9, 12288  ;;  %p4228_p6 = scmp.lt.s32.totalorder %s54_s9, %s54_s9 }
  0x12   :  { %p4224_p5 = scmp.ne.s32.totalorder %s54_s9, %s4223_s10  ;;  %p4229_p7 = scmp.lt.s32.totalorder %s4223_s10, %s4223_s10 }
  0x14   :  { %p4230_p8 = por %p4229_p7, %p4228_p6 }
  0x16   :  { %p4231_p9 = pnand %p4230_p8, %p4224_p5 }
  0x18   :  { %4234 = shalt.err (!%p4231_p9)
}
  0x19   :  { %s4347_s11 = smov 128   ;;  %s4348_s12 = smov 8  }
  0x1a   :  { %59 = dma.hbm_to_vmem [thread:$0]  %s4495_s3, 12288, %s54_s9, [#allocation8], %s4347_s11, %s4347_s11, %s4348_s12  }
  0x1b   :  { %s4349_s15 = smov [#allocation10]  }
  0x1c   :  { %s75_s16 = sshll.u32 %s4349_s15, 4  ;;  %s76_s16 = int_to_ptr.vmem [resolvable:$true] %s75_s16 }
  0x1d   :  { %s4243_s1 = scalar_lea.vmem %s76_s16, 2048  ;;  %p4248_p11 = scmp.lt.s32.totalorder %s76_s16, %s76_s16 }
  0x1e   :  { %p4244_p10 = scmp.ne.s32.totalorder %s76_s16, %s4243_s1  ;;  %p4249_p12 = scmp.lt.s32.totalorder %s4243_s1, %s4243_s1 }
  0x20   :  { %p4250_p13 = por %p4249_p12, %p4248_p11 }
  0x22   :  { %p4251_p0 = pnand %p4250_p13, %p4244_p10 }
  0x24   :  { %4254 = shalt.err (!%p4251_p0)
}
  0x25   :  { %s4350_s17 = smov 64   ;;  %s4351_s18 = smov 4  }
  0x26   :  { %81 = dma.hbm_to_vmem [thread:$0]  %s4497_s5, 2048, %s76_s16, [#allocation11], %s4350_s17, %s4350_s17, %s4351_s18  }
  0x27   :  { %s4352_s21 = smov [#allocation2]   ;;  %s4353_s3 = smov [#allocation6]  }
  0x28   :  { %s22_s22 = sshll.u32 %s4352_s21, 4  ;;  %s44_s23 = sshll.u32 %s4353_s3, 4  ;;  %s23_s22 = int_to_ptr.vmem [resolvable:$true] %s22_s22  ;;  %s45_s23 = int_to_ptr.vmem [resolvable:$true] %s44_s23 }
  0x29   :  { %s4263_s24 = scalar_lea.vmem %s23_s22, 768  ;;  %p4268_p2 = scmp.lt.s32.totalorder %s23_s22, %s23_s22 }
  0x2a   :  { %p4264_p1 = scmp.ne.s32.totalorder %s23_s22, %s4263_s24  ;;  %p4269_p3 = scmp.lt.s32.totalorder %s4263_s24, %s4263_s24 }
  0x2c   :  { %p4270_p4 = por %p4269_p3, %p4268_p2 }
  0x2e   :  { %p4271_p5 = pnand %p4270_p4, %p4264_p1 }
  0x30   :  { %4274 = shalt.err (!%p4271_p5)
}
  0x31   :  { %25 = dma.hbm_to_vmem [thread:$0]  %s4492_s0, 768, %s23_s22, [#allocation3]  }
  0x32   :  { %s4283_s27 = scalar_lea.vmem %s45_s23, 96  ;;  %p4288_p7 = scmp.lt.s32.totalorder %s45_s23, %s45_s23 }
  0x33   :  { %p4284_p6 = scmp.ne.s32.totalorder %s45_s23, %s4283_s27  ;;  %p4289_p8 = scmp.lt.s32.totalorder %s4283_s27, %s4283_s27 }
  0x35   :  { %p4290_p9 = por %p4289_p8, %p4288_p7 }
  0x37   :  { %p4291_p10 = pnand %p4290_p9, %p4284_p6 }
  0x39   :  { %4294 = shalt.err (!%p4291_p10)
}
  0x3a   :  { %47 = dma.hbm_to_vmem [thread:$0]  %s4494_s2, 96, %s45_s23, [#allocation5]  }
  0x3b   :  { %s4354_s29 = smov [#allocation9]   ;;  %s4355_s8 = smov [#allocation12]  }
  0x3c   :  { %s66_s30 = sshll.u32 %s4354_s29, 4  ;;  %s88_s9 = sshll.u32 %s4355_s8, 4  ;;  %s67_s30 = int_to_ptr.vmem [resolvable:$true] %s66_s30  ;;  %s89_s9 = int_to_ptr.vmem [resolvable:$true] %s88_s9 }
  0x3d   :  { %s4303_s10 = scalar_lea.vmem %s67_s30, 32  ;;  %p4308_p12 = scmp.lt.s32.totalorder %s67_s30, %s67_s30 }
  0x3e   :  { %p4304_p11 = scmp.ne.s32.totalorder %s67_s30, %s4303_s10  ;;  %p4309_p13 = scmp.lt.s32.totalorder %s4303_s10, %s4303_s10 }
  0x40   :  { %p4310_p0 = por %p4309_p13, %p4308_p12 }
  0x42   :  { %p4311_p1 = pnand %p4310_p0, %p4304_p11 }
  0x44   :  { %4314 = shalt.err (!%p4311_p1)
}
  0x45   :  { %69 = dma.hbm_to_vmem [thread:$0]  %s4496_s4, 32, %s67_s30, [#allocation8]  }
  0x46   :  { %s4323_s12 = scalar_lea.vmem %s89_s9, 16  ;;  %s4327_s2 = scalar_lea.vmem %s89_s9, 32 }
  0x47   :  { %p4324_p2 = scmp.ne.s32.totalorder %s89_s9, %s4323_s12  ;;  %p4328_p3 = scmp.lt.s32.totalorder %s89_s9, %s89_s9 }
  0x48   :  { %p4329_p4 = scmp.lt.s32.totalorder %s4327_s2, %s4323_s12 }
  0x4a   :  { %p4330_p5 = por %p4329_p4, %p4328_p3 }
  0x4c   :  { %p4331_p6 = pnand %p4330_p5, %p4324_p2 }
  0x4e   :  { %4334 = shalt.err (!%p4331_p6)
}
  0x4f   :  { %91 = dma.hbm_to_vmem [thread:$0]  %s4498_s6, 16, %s89_s9, [#allocation11]  }
  0x50   :  { %4335 = dma.done.wait [#allocation3], 768  }
  0x51   :  { %4336 = vsyncadd [#allocation3], 4294966528 }
  0x52   :  { %4337 = dma.done.wait [#allocation5], 36960  }
  0x53   :  { %4338 = vsyncadd [#allocation5], 4294930336 }
  0x54   :  { %4339 = dma.done.wait [#allocation8], 12320  }
  0x55   :  { %4340 = vsyncadd [#allocation8], 4294954976 }
  0x56   :  { %4341 = dma.done.wait [#allocation11], 2064  }
  0x57   :  { %4342 = vsyncadd [#allocation11], 4294965232  ;;  %v3603_v0 = vld [vmem:[#allocation4 + $0x154] ss:$24 sps:$4 sm:$0xff]   ;;  %v3605_v1 = vld [vmem:[#allocation4 + $0x150] ss:$24 sps:$4 sm:$0xff]  }
  0x58   :  { %1886 = vmatprep.subr.bf16.mxu0 %v3603_v0  ;;  %v3606_v2 = vld [vmem:[#allocation4 + $0x454] ss:$24 sps:$4 sm:$0xff]   ;;  %v3608_v3 = vld [vmem:[#allocation4 + $0x450] ss:$24 sps:$4 sm:$0xff]   ;;  %v3609_v4 = vld [vmem:[#allocation4 + $0x124] ss:$24 sps:$4 sm:$0xff]  }
  0x59   :  { %1887 = vmatpush1.bf16.msra.mxu0 %v3605_v1  ;;  %v3611_v5 = vld [vmem:[#allocation4 + $0x120] ss:$24 sps:$4 sm:$0xff]   ;;  %1927 = vmatprep.subr.bf16.mxu1 %v3606_v2  ;;  %v3612_v6 = vld [vmem:[#allocation4 + $0x424] ss:$24 sps:$4 sm:$0xff]   ;;  %v3615_v8 = vld [vmem:[#allocation4 + $0xf4] ss:$24 sps:$4 sm:$0xff]  }
  0x5a   :  { %1928 = vmatpush1.bf16.msra.mxu1 %v3608_v3  ;;  %1888 = vmatprep.subr.bf16.mxu0 %v3609_v4  ;;  %v3614_v7 = vld [vmem:[#allocation4 + $0x420] ss:$24 sps:$4 sm:$0xff]   ;;  %v3617_v9 = vld [vmem:[#allocation4 + $0xf0] ss:$24 sps:$4 sm:$0xff]   ;;  %v3618_v10 = vld [vmem:[#allocation4 + $0x3f4] ss:$24 sps:$4 sm:$0xff]  }
  0x5b   :  { %1929 = vmatprep.subr.bf16.mxu1 %v3612_v6  ;;  %v3621_v11 = vld [vmem:[#allocation4 + $0xc4] ss:$24 sps:$4 sm:$0xff]   ;;  %v3620_v12 = vld [vmem:[#allocation4 + $0x3f0] ss:$24 sps:$4 sm:$0xff]   ;;  %v3623_v14 = vld [vmem:[#allocation4 + $0xc0] ss:$24 sps:$4 sm:$0xff]  }
  0x5c   :  { %v3624_v13 = vld [vmem:[#allocation4 + $0x3c4] ss:$24 sps:$4 sm:$0xff]   ;;  %v3627_v15 = vld [vmem:[#allocation4 + $0x94] ss:$24 sps:$4 sm:$0xff]   ;;  %v3626_v16 = vld [vmem:[#allocation4 + $0x3c0] ss:$24 sps:$4 sm:$0xff]  }
  0x5d   :  { %1889 = vmatpush1.bf16.msra.mxu0 %v3611_v5  ;;  %v3630_v17 = vld [vmem:[#allocation4 + $0x394] ss:$24 sps:$4 sm:$0xff]   ;;  %v3629_v18 = vld [vmem:[#allocation4 + $0x90] ss:$24 sps:$4 sm:$0xff]   ;;  %v3633_v19 = vld [vmem:[#allocation4 + $0x64] ss:$24 sps:$4 sm:$0xff]  }
  0x5e   :  { %1890 = vmatprep.subr.bf16.mxu0 %v3615_v8  ;;  %1930 = vmatpush1.bf16.msra.mxu1 %v3614_v7  ;;  %v3632_v20 = vld [vmem:[#allocation4 + $0x390] ss:$24 sps:$4 sm:$0xff]   ;;  %v3636_v21 = vld [vmem:[#allocation4 + $0x364] ss:$24 sps:$4 sm:$0xff]   ;;  %v3635_v22 = vld [vmem:[#allocation4 + $0x60] ss:$24 sps:$4 sm:$0xff]  }
  0x5f   :  { %1931 = vmatprep.subr.bf16.mxu1 %v3618_v10  ;;  %v3639_v23 = vld [vmem:[#allocation4 + $0x34] ss:$24 sps:$4 sm:$0xff]   ;;  %v3638_v24 = vld [vmem:[#allocation4 + $0x360] ss:$24 sps:$4 sm:$0xff]   ;;  %v3641_v26 = vld [vmem:[#allocation4 + $0x30] ss:$24 sps:$4 sm:$0xff]  }
  0x60   :  { %v3642_v25 = vld [vmem:[#allocation4 + $0x334] ss:$24 sps:$4 sm:$0xff]   ;;  %v3645_v27 = vld [vmem:[#allocation4 + $0x4] ss:$24 sps:$4 sm:$0xff]   ;;  %v3644_v28 = vld [vmem:[#allocation4 + $0x330] ss:$24 sps:$4 sm:$0xff]  }
  0x61   :  { %1891 = vmatpush1.bf16.msra.mxu0 %v3617_v9  ;;  %v3648_v29 = vld [vmem:[#allocation4 + $0x304] ss:$24 sps:$4 sm:$0xff]   ;;  %v3647_v30 = vld [vmem:[#allocation4] ss:$24 sps:$4 sm:$0xff]   ;;  %v3651_v31 = vld [vmem:[#allocation4 + $0x2d4] ss:$24 sps:$4 sm:$0xff]  }
  0x62   :  { %1892 = vmatprep.subr.bf16.mxu0 %v3621_v11  ;;  %1932 = vmatpush1.bf16.msra.mxu1 %v3620_v12  ;;  %v3650_v32 = vld [vmem:[#allocation4 + $0x300] ss:$24 sps:$4 sm:$0xff]   ;;  %v3654_v33 = vld [vmem:[#allocation4 + $0x5d4] ss:$24 sps:$4 sm:$0xff]   ;;  %v3653_v34 = vld [vmem:[#allocation4 + $0x2d0] ss:$24 sps:$4 sm:$0xff]  }
  0x63   :  { %1933 = vmatprep.subr.bf16.mxu1 %v3624_v13  ;;  %v3657_v35 = vld [vmem:[#allocation4 + $0x2a4] ss:$24 sps:$4 sm:$0xff]   ;;  %v3656_v36 = vld [vmem:[#allocation4 + $0x5d0] ss:$24 sps:$4 sm:$0xff]   ;;  %v3659_v38 = vld [vmem:[#allocation4 + $0x2a0] ss:$24 sps:$4 sm:$0xff]  }
  0x64   :  { %v3660_v37 = vld [vmem:[#allocation4 + $0x5a4] ss:$24 sps:$4 sm:$0xff]   ;;  %v3663_v39 = vld [vmem:[#allocation4 + $0x274] ss:$24 sps:$4 sm:$0xff]   ;;  %v3662_v40 = vld [vmem:[#allocation4 + $0x5a0] ss:$24 sps:$4 sm:$0xff]  }
  0x65   :  { %1893 = vmatpush1.bf16.msra.mxu0 %v3623_v14  ;;  %v3666_v41 = vld [vmem:[#allocation4 + $0x574] ss:$24 sps:$4 sm:$0xff]   ;;  %v3665_v42 = vld [vmem:[#allocation4 + $0x270] ss:$24 sps:$4 sm:$0xff]   ;;  %v3669_v43 = vld [vmem:[#allocation4 + $0x244] ss:$24 sps:$4 sm:$0xff]  }
  0x66   :  { %1894 = vmatprep.subr.bf16.mxu0 %v3627_v15  ;;  %1934 = vmatpush1.bf16.msra.mxu1 %v3626_v16  ;;  %v3668_v44 = vld [vmem:[#allocation4 + $0x570] ss:$24 sps:$4 sm:$0xff]   ;;  %v3672_v45 = vld [vmem:[#allocation4 + $0x544] ss:$24 sps:$4 sm:$0xff]   ;;  %v3671_v47 = vld [vmem:[#allocation4 + $0x240] ss:$24 sps:$4 sm:$0xff]  }
  0x67   :  { %1935 = vmatprep.subr.bf16.mxu1 %v3630_v17  ;;  %v115_v46 = vld [vmem:[#allocation2 + $0x8] sm:$0xff]  ;;  %v3675_v49 = vld [vmem:[#allocation4 + $0x214] ss:$24 sps:$4 sm:$0xff]   ;;  %v3677_v54 = vld [vmem:[#allocation4 + $0x210] ss:$24 sps:$4 sm:$0xff]   ;;  %vm3157_vm0 = vcmask 15360  }
  0x68   :  { %v4417_v48 = vpack.c.bf16 %v115_v46, %v115_v46  ;;  %v117_v50 = vld [vmem:[#allocation2 + $0x18] sm:$0xff]  ;;  %v3674_v51 = vld [vmem:[#allocation4 + $0x540] ss:$24 sps:$4 sm:$0xff]   ;;  %v3681_v55 = vld [vmem:[#allocation4 + $0x1e4] ss:$24 sps:$4 sm:$0xff]  }
  0x69   :  { %1895 = vmatpush1.bf16.msra.mxu0 %v3629_v18  ;;  %v4420_v52 = vpack.c.bf16 %v117_v50, %v117_v50  ;;  %v3678_v53 = vld [vmem:[#allocation4 + $0x514] ss:$24 sps:$4 sm:$0xff]   ;;  %v3680_v56 = vld [vmem:[#allocation4 + $0x510] ss:$24 sps:$4 sm:$0xff]   ;;  %v3684_v57 = vld [vmem:[#allocation4 + $0x4e4] ss:$24 sps:$4 sm:$0xff]  }
  0x6a   :  { %1896 = vmatprep.subr.bf16.mxu0 %v3633_v19  ;;  %1936 = vmatpush1.bf16.msra.mxu1 %v3632_v20  ;;  %v3683_v58 = vld [vmem:[#allocation4 + $0x1e0] ss:$24 sps:$4 sm:$0xff]   ;;  %v3687_v59 = vld [vmem:[#allocation4 + $0x1b4] ss:$24 sps:$4 sm:$0xff]   ;;  %v3689_v62 = vld [vmem:[#allocation4 + $0x1b0] ss:$24 sps:$4 sm:$0xff]  }
  0x6b   :  { %1937 = vmatprep.subr.bf16.mxu1 %v3636_v21  ;;  %1918 = vmatprep.mubr.bf16.mxu0 %v4417_v48  ;;  %v3686_v60 = vld [vmem:[#allocation4 + $0x4e0] ss:$24 sps:$4 sm:$0xff]   ;;  %v3690_v61 = vld [vmem:[#allocation4 + $0x4b4] ss:$24 sps:$4 sm:$0xff]   ;;  %v3693_v63 = vld [vmem:[#allocation4 + $0x184] ss:$24 sps:$4 sm:$0xff]  }
  0x6c   :  { %1959 = vmatprep.mubr.bf16.mxu1 %v4420_v52  ;;  %v3692_v0 = vld [vmem:[#allocation4 + $0x4b0] ss:$24 sps:$4 sm:$0xff]   ;;  %v3695_v1 = vld [vmem:[#allocation4 + $0x180] ss:$24 sps:$4 sm:$0xff]   ;;  %v3696_v2 = vld [vmem:[#allocation4 + $0x484] ss:$24 sps:$4 sm:$0xff]  }
  0x6d   :  { %1897 = vmatpush1.bf16.msra.mxu0 %v3635_v22  ;;  %v3698_v3 = vld [vmem:[#allocation4 + $0x480] ss:$24 sps:$4 sm:$0xff]   ;;  %v114_v4 = vld [vmem:[#allocation2] sm:$0xff]  ;;  %v3707_v11 = vld [vmem:[#allocation4 + $0x724] ss:$24 sps:$4 sm:$0xff]  }
  0x6e   :  { %1898 = vmatprep.subr.bf16.mxu0 %v3639_v23  ;;  %1938 = vmatpush1.bf16.msra.mxu1 %v3638_v24  ;;  %v3701_v5 = vld [vmem:[#allocation4 + $0x754] ss:$24 sps:$4 sm:$0xff]   ;;  %v116_v6 = vld [vmem:[#allocation2 + $0x10] sm:$0xff]  ;;  %v4423_v7 = vpack.c.bf16 %v114_v4, %v114_v4  ;;  %v3699_v9 = vld [vmem:[#allocation4 + $0x750] ss:$24 sps:$4 sm:$0xff]  }
  0x6f   :  { %1939 = vmatprep.subr.bf16.mxu1 %v3642_v25  ;;  %v3704_v8 = vld [vmem:[#allocation4 + $0x15c] ss:$24 sps:$4 sm:$0xff]   ;;  %v4425_v10 = vpack.c.bf16 %v116_v6, %v116_v6  ;;  %v3702_v12 = vld [vmem:[#allocation4 + $0x158] ss:$24 sps:$4 sm:$0xff]   ;;  %v3710_v13 = vld [vmem:[#allocation4 + $0x12c] ss:$24 sps:$4 sm:$0xff]  }
  0x70   :  { %v3705_v14 = vld [vmem:[#allocation4 + $0x720] ss:$24 sps:$4 sm:$0xff]   ;;  %v3713_v15 = vld [vmem:[#allocation4 + $0x6f4] ss:$24 sps:$4 sm:$0xff]   ;;  %v3711_v18 = vld [vmem:[#allocation4 + $0x6f0] ss:$24 sps:$4 sm:$0xff]  }
  0x71   :  { %1899 = vmatpush1.bf16.msra.mxu0 %v3641_v26  ;;  %v3708_v16 = vld [vmem:[#allocation4 + $0x128] ss:$24 sps:$4 sm:$0xff]   ;;  %v3716_v17 = vld [vmem:[#allocation4 + $0xfc] ss:$24 sps:$4 sm:$0xff]   ;;  %v3714_v20 = vld [vmem:[#allocation4 + $0xf8] ss:$24 sps:$4 sm:$0xff]  }
  0x72   :  { %1900 = vmatprep.subr.bf16.mxu0 %v3645_v27  ;;  %1940 = vmatpush1.bf16.msra.mxu1 %v3644_v28  ;;  %v3719_v19 = vld [vmem:[#allocation4 + $0x6c4] ss:$24 sps:$4 sm:$0xff]   ;;  %v3717_v22 = vld [vmem:[#allocation4 + $0x6c0] ss:$24 sps:$4 sm:$0xff]   ;;  %v3725_v23 = vld [vmem:[#allocation4 + $0x694] ss:$24 sps:$4 sm:$0xff]  }
  0x73   :  { %1941 = vmatprep.subr.bf16.mxu1 %v3648_v29  ;;  %v3722_v21 = vld [vmem:[#allocation4 + $0xcc] ss:$24 sps:$4 sm:$0xff]   ;;  %v3720_v24 = vld [vmem:[#allocation4 + $0xc8] ss:$24 sps:$4 sm:$0xff]   ;;  %v3728_v25 = vld [vmem:[#allocation4 + $0x9c] ss:$24 sps:$4 sm:$0xff]  }
  0x74   :  { %v3723_v26 = vld [vmem:[#allocation4 + $0x690] ss:$24 sps:$4 sm:$0xff]   ;;  %v3731_v27 = vld [vmem:[#allocation4 + $0x664] ss:$24 sps:$4 sm:$0xff]   ;;  %v3761_v50 = vld [vmem:[#allocation4 + $0x874] ss:$24 sps:$4 sm:$0xff]  }
  0x75   :  { %1901 = vmatpush1.bf16.msra.mxu0 %v3647_v30  ;;  %v3726_v28 = vld [vmem:[#allocation4 + $0x98] ss:$24 sps:$4 sm:$0xff]   ;;  %v3734_v29 = vld [vmem:[#allocation4 + $0x6c] ss:$24 sps:$4 sm:$0xff]   ;;  %v3780_v4 = vld [vmem:[#allocation4 + $0x1e8] ss:$24 sps:$4 sm:$0xff]  }
  0x76   :  { %1902 = vmatprep.subr.bf16.mxu0 %v3651_v31  ;;  %1942 = vmatpush1.bf16.msra.mxu1 %v3650_v32  ;;  %v3729_v30 = vld [vmem:[#allocation4 + $0x660] ss:$24 sps:$4 sm:$0xff]   ;;  %v3737_v31 = vld [vmem:[#allocation4 + $0x634] ss:$24 sps:$4 sm:$0xff]   ;;  %v3783_v6 = vld [vmem:[#allocation4 + $0x7b0] ss:$24 sps:$4 sm:$0xff]  }
  0x77   :  { %1943 = vmatprep.subr.bf16.mxu1 %v3654_v33  ;;  %v3732_v32 = vld [vmem:[#allocation4 + $0x68] ss:$24 sps:$4 sm:$0xff]   ;;  %v3740_v33 = vld [vmem:[#allocation4 + $0x3c] ss:$24 sps:$4 sm:$0xff]   ;;  %v3750_v46 = vld [vmem:[#allocation4 + $0x2d8] ss:$24 sps:$4 sm:$0xff]  }
  0x79   :  { %1903 = vmatpush2.bf16.msra.mxu0 %v3653_v34  ;;  %v119_v34 = vld [vmem:[#allocation2 + $0x28] sm:$0xff] }
  0x7a   :  { %1904 = vmatprep.subr.bf16.mxu0 %v3657_v35  ;;  %1944 = vmatpush2.bf16.msra.mxu1 %v3656_v36  ;;  %v3735_v35 = vld [vmem:[#allocation4 + $0x630] ss:$24 sps:$4 sm:$0xff]   ;;  %v4430_v36 = vpack.c.bf16 %v119_v34, %v119_v34 }
  0x7b   :  { %1945 = vmatprep.subr.bf16.mxu1 %v3660_v37  ;;  %v3743_v37 = vld [vmem:[#allocation4 + $0x604] ss:$24 sps:$4 sm:$0xff]   ;;  %v3819_v34 = vld [vmem:[#allocation4 + $0x398] ss:$24 sps:$4 sm:$0xff]  }
  0x7d   :  { %1905 = vmatpush2.bf16.msra.mxu0 %v3659_v38  ;;  %v3738_v38 = vld [vmem:[#allocation4 + $0x38] ss:$24 sps:$4 sm:$0xff]  }
  0x7e   :  { %1906 = vmatprep.subr.bf16.mxu0 %v3663_v39  ;;  %1946 = vmatpush2.bf16.msra.mxu1 %v3662_v40  ;;  %v3746_v39 = vld [vmem:[#allocation4 + $0xc] ss:$24 sps:$4 sm:$0xff]   ;;  %v3741_v40 = vld [vmem:[#allocation4 + $0x600] ss:$24 sps:$4 sm:$0xff]  }
  0x7f   :  { %1947 = vmatprep.subr.bf16.mxu1 %v3666_v41  ;;  %v3749_v41 = vld [vmem:[#allocation4 + $0x8d4] ss:$24 sps:$4 sm:$0xff]  }
  0x81   :  { %1907 = vmatpush2.bf16.msra.mxu0 %v3665_v42  ;;  %v3744_v42 = vld [vmem:[#allocation4 + $0x8] ss:$24 sps:$4 sm:$0xff]  }
  0x82   :  { %1908 = vmatprep.subr.bf16.mxu0 %v3669_v43  ;;  %1948 = vmatpush2.bf16.msra.mxu1 %v3668_v44  ;;  %v3752_v43 = vld [vmem:[#allocation4 + $0x2dc] ss:$24 sps:$4 sm:$0xff]   ;;  %v3747_v44 = vld [vmem:[#allocation4 + $0x8d0] ss:$24 sps:$4 sm:$0xff]  }
  0x83   :  { %1949 = vmatprep.subr.bf16.mxu1 %v3672_v45  ;;  %v3755_v45 = vld [vmem:[#allocation4 + $0x8a4] ss:$24 sps:$4 sm:$0xff]  }
  0x85   :  { %1909 = vmatpush2.bf16.msra.mxu0 %v3671_v47  ;;  %v3758_v47 = vld [vmem:[#allocation4 + $0x2ac] ss:$24 sps:$4 sm:$0xff]  }
  0x86   :  { %1910 = vmatprep.subr.bf16.mxu0 %v3675_v49  ;;  %1950 = vmatpush2.bf16.msra.mxu1 %v3674_v51  ;;  %v3753_v49 = vld [vmem:[#allocation4 + $0x8a0] ss:$24 sps:$4 sm:$0xff]  }
  0x87   :  { %1951 = vmatprep.subr.bf16.mxu1 %v3678_v53  ;;  %v3756_v51 = vld [vmem:[#allocation4 + $0x2a8] ss:$24 sps:$4 sm:$0xff]   ;;  %v3764_v53 = vld [vmem:[#allocation4 + $0x27c] ss:$24 sps:$4 sm:$0xff]  }
  0x89   :  { %1911 = vmatpush2.bf16.msra.mxu0 %v3677_v54  ;;  %v3759_v54 = vld [vmem:[#allocation4 + $0x870] ss:$24 sps:$4 sm:$0xff]  }
  0x8a   :  { %1912 = vmatprep.subr.bf16.mxu0 %v3681_v55  ;;  %1952 = vmatpush2.bf16.msra.mxu1 %v3680_v56  ;;  %v3767_v55 = vld [vmem:[#allocation4 + $0x844] ss:$24 sps:$4 sm:$0xff]   ;;  %v3762_v56 = vld [vmem:[#allocation4 + $0x278] ss:$24 sps:$4 sm:$0xff]  }
  0x8b   :  { %1953 = vmatprep.subr.bf16.mxu1 %v3684_v57  ;;  %v3770_v57 = vld [vmem:[#allocation4 + $0x24c] ss:$24 sps:$4 sm:$0xff]  }
  0x8d   :  { %1913 = vmatpush2.bf16.msra.mxu0 %v3683_v58  ;;  %v3765_v58 = vld [vmem:[#allocation4 + $0x840] ss:$24 sps:$4 sm:$0xff]  }
  0x8e   :  { %1914 = vmatprep.subr.bf16.mxu0 %v3687_v59  ;;  %1954 = vmatpush2.bf16.msra.mxu1 %v3686_v60  ;;  %v3773_v59 = vld [vmem:[#allocation4 + $0x814] ss:$24 sps:$4 sm:$0xff]   ;;  %v3768_v60 = vld [vmem:[#allocation4 + $0x248] ss:$24 sps:$4 sm:$0xff]  }
  0x8f   :  { %1955 = vmatprep.subr.bf16.mxu1 %v3690_v61  ;;  %v3776_v61 = vld [vmem:[#allocation4 + $0x21c] ss:$24 sps:$4 sm:$0xff]  }
  0x91   :  { %1915 = vmatpush2.bf16.msra.mxu0 %v3689_v62  ;;  %v3771_v62 = vld [vmem:[#allocation4 + $0x810] ss:$24 sps:$4 sm:$0xff]  }
  0x92   :  { %1916 = vmatprep.subr.bf16.mxu0 %v3693_v63  ;;  %1956 = vmatpush2.bf16.msra.mxu1 %v3692_v0  ;;  %v3779_v63 = vld [vmem:[#allocation4 + $0x7e4] ss:$24 sps:$4 sm:$0xff]   ;;  %v3774_v0 = vld [vmem:[#allocation4 + $0x218] ss:$24 sps:$4 sm:$0xff]  }
  0x93   :  { %1957 = vmatprep.subr.bf16.mxu1 %v3696_v2  ;;  %v3777_v2 = vld [vmem:[#allocation4 + $0x7e0] ss:$24 sps:$4 sm:$0xff]  }
  0x95   :  { %1917 = vmatpush2.bf16.msra.mxu0 %v3695_v1  ;;  %v3782_v1 = vld [vmem:[#allocation4 + $0x1ec] ss:$24 sps:$4 sm:$0xff]  }
  0x96   :  { %1968 = vmatprep.subr.bf16.mxu0 %v3701_v5  ;;  %1958 = vmatpush2.bf16.msra.mxu1 %v3698_v3  ;;  %v3785_v3 = vld [vmem:[#allocation4 + $0x7b4] ss:$24 sps:$4 sm:$0xff]  }
  0x97   :  { %2009 = vmatprep.subr.bf16.mxu1 %v3704_v8  ;;  %v3788_v5 = vld [vmem:[#allocation4 + $0x1bc] ss:$24 sps:$4 sm:$0xff]  }
  0x98   :  { %1919 = vmatmul.mubr.bf16.vlgmr.msra.gmra.mxu0 %v4423_v7  ;;  %v3791_v8 = vld [vmem:[#allocation4 + $0x784] ss:$24 sps:$4 sm:$0xff]  }
  0x99   :  { %1969 = vmatpush1.bf16.msra.mxu0 %v3699_v9  ;;  %1960 = vmatmul.mubr.bf16.vlgmr.msra.gmra.mxu1 %v4425_v10  ;;  %v3786_v9 = vld [vmem:[#allocation4 + $0x1b8] ss:$24 sps:$4 sm:$0xff]  }
  0x9a   :  { %1970 = vmatprep.subr.bf16.mxu0 %v3707_v11  ;;  %2010 = vmatpush1.bf16.msra.mxu1 %v3702_v12  ;;  %v3789_v11 = vld [vmem:[#allocation4 + $0x780] ss:$24 sps:$4 sm:$0xff]   ;;  %v3794_v12 = vld [vmem:[#allocation4 + $0x18c] ss:$24 sps:$4 sm:$0xff]  }
  0x9b   :  { %2041 = vmatprep.mubr.bf16.mxu1 %v4417_v48  ;;  %2011 = vmatprep.subr.bf16.mxu1 %v3710_v13  ;;  %v118_v13 = vld [vmem:[#allocation2 + $0x20] sm:$0xff] }
  0x9c   :  { %2000 = vmatprep.mubr.bf16.mxu0 %v4430_v36 }
  0x9d   :  { %1971 = vmatpush1.bf16.msra.mxu0 %v3705_v14  ;;  %v3797_v14 = vld [vmem:[#allocation4 + $0x45c] ss:$24 sps:$4 sm:$0xff]  }
  0x9e   :  { %1972 = vmatprep.subr.bf16.mxu0 %v3713_v15  ;;  %2012 = vmatpush1.bf16.msra.mxu1 %v3708_v16  ;;  %v3792_v15 = vld [vmem:[#allocation4 + $0x188] ss:$24 sps:$4 sm:$0xff]   ;;  %v4433_v16 = vpack.c.bf16 %v118_v13, %v118_v13 }
  0x9f   :  { %2013 = vmatprep.subr.bf16.mxu1 %v3716_v17  ;;  %v3800_v17 = vld [vmem:[#allocation4 + $0x75c] ss:$24 sps:$4 sm:$0xff]   ;;  %v3876_v13 = vld [vmem:[#allocation4 + $0x7e8] ss:$24 sps:$4 sm:$0xff]  }
  0xa1   :  { %1973 = vmatpush1.bf16.msra.mxu0 %v3711_v18  ;;  %v3795_v18 = vld [vmem:[#allocation4 + $0x458] ss:$24 sps:$4 sm:$0xff]  }
  0xa2   :  { %1974 = vmatprep.subr.bf16.mxu0 %v3719_v19  ;;  %2014 = vmatpush1.bf16.msra.mxu1 %v3714_v20  ;;  %v3803_v19 = vld [vmem:[#allocation4 + $0x42c] ss:$24 sps:$4 sm:$0xff]   ;;  %v3798_v20 = vld [vmem:[#allocation4 + $0x758] ss:$24 sps:$4 sm:$0xff]  }
  0xa3   :  { %2015 = vmatprep.subr.bf16.mxu1 %v3722_v21  ;;  %v3806_v21 = vld [vmem:[#allocation4 + $0x72c] ss:$24 sps:$4 sm:$0xff]  }
  0xa5   :  { %1975 = vmatpush1.bf16.msra.mxu0 %v3717_v22  ;;  %v3801_v22 = vld [vmem:[#allocation4 + $0x428] ss:$24 sps:$4 sm:$0xff]  }
  0xa6   :  { %1976 = vmatprep.subr.bf16.mxu0 %v3725_v23  ;;  %2016 = vmatpush1.bf16.msra.mxu1 %v3720_v24  ;;  %v3809_v23 = vld [vmem:[#allocation4 + $0x3fc] ss:$24 sps:$4 sm:$0xff]   ;;  %v3804_v24 = vld [vmem:[#allocation4 + $0x728] ss:$24 sps:$4 sm:$0xff]  }
  0xa7   :  { %2017 = vmatprep.subr.bf16.mxu1 %v3728_v25  ;;  %v3812_v25 = vld [vmem:[#allocation4 + $0x6fc] ss:$24 sps:$4 sm:$0xff]  }
  0xa9   :  { %1977 = vmatpush1.bf16.msra.mxu0 %v3723_v26  ;;  %v3807_v26 = vld [vmem:[#allocation4 + $0x3f8] ss:$24 sps:$4 sm:$0xff]  }
  0xaa   :  { %1978 = vmatprep.subr.bf16.mxu0 %v3731_v27  ;;  %2018 = vmatpush1.bf16.msra.mxu1 %v3726_v28  ;;  %v3815_v27 = vld [vmem:[#allocation4 + $0x3cc] ss:$24 sps:$4 sm:$0xff]   ;;  %v3810_v28 = vld [vmem:[#allocation4 + $0x6f8] ss:$24 sps:$4 sm:$0xff]  }
  0xab   :  { %2019 = vmatprep.subr.bf16.mxu1 %v3734_v29  ;;  %v3818_v29 = vld [vmem:[#allocation4 + $0x6cc] ss:$24 sps:$4 sm:$0xff]  }
  0xad   :  { %1979 = vmatpush1.bf16.msra.mxu0 %v3729_v30  ;;  %v3813_v30 = vld [vmem:[#allocation4 + $0x3c8] ss:$24 sps:$4 sm:$0xff]  }
  0xae   :  { %1980 = vmatprep.subr.bf16.mxu0 %v3737_v31  ;;  %2020 = vmatpush1.bf16.msra.mxu1 %v3732_v32  ;;  %v3821_v31 = vld [vmem:[#allocation4 + $0x39c] ss:$24 sps:$4 sm:$0xff]   ;;  %v3816_v32 = vld [vmem:[#allocation4 + $0x6c8] ss:$24 sps:$4 sm:$0xff]  }
  0xaf   :  { %2021 = vmatprep.subr.bf16.mxu1 %v3740_v33  ;;  %v3824_v33 = vld [vmem:[#allocation4 + $0x69c] ss:$24 sps:$4 sm:$0xff]  }
  0xb1   :  { %1981 = vmatpush1.bf16.msra.mxu0 %v3735_v35  ;;  %v3827_v35 = vld [vmem:[#allocation4 + $0x36c] ss:$24 sps:$4 sm:$0xff]  }
  0xb2   :  { %1982 = vmatprep.subr.bf16.mxu0 %v3743_v37  ;;  %2022 = vmatpush1.bf16.msra.mxu1 %v3738_v38  ;;  %v3822_v37 = vld [vmem:[#allocation4 + $0x698] ss:$24 sps:$4 sm:$0xff]   ;;  %v3830_v38 = vld [vmem:[#allocation4 + $0x66c] ss:$24 sps:$4 sm:$0xff]  }
  0xb3   :  { %2023 = vmatprep.subr.bf16.mxu1 %v3746_v39  ;;  %v3825_v39 = vld [vmem:[#allocation4 + $0x368] ss:$24 sps:$4 sm:$0xff]  }
  0xb5   :  { %1983 = vmatpush1.bf16.msra.mxu0 %v3741_v40  ;;  %v3833_v40 = vld [vmem:[#allocation4 + $0x33c] ss:$24 sps:$4 sm:$0xff]  }
  0xb6   :  { %1984 = vmatprep.subr.bf16.mxu0 %v3749_v41  ;;  %2024 = vmatpush1.bf16.msra.mxu1 %v3744_v42  ;;  %v3828_v41 = vld [vmem:[#allocation4 + $0x668] ss:$24 sps:$4 sm:$0xff]   ;;  %v3836_v42 = vld [vmem:[#allocation4 + $0x63c] ss:$24 sps:$4 sm:$0xff]  }
  0xb7   :  { %2025 = vmatprep.subr.bf16.mxu1 %v3752_v43  ;;  %v3831_v43 = vld [vmem:[#allocation4 + $0x338] ss:$24 sps:$4 sm:$0xff]  }
  0xb9   :  { %1985 = vmatpush2.bf16.msra.mxu0 %v3747_v44  ;;  %v3839_v44 = vld [vmem:[#allocation4 + $0x30c] ss:$24 sps:$4 sm:$0xff]  }
  0xba   :  { %1986 = vmatprep.subr.bf16.mxu0 %v3755_v45  ;;  %2026 = vmatpush2.bf16.msra.mxu1 %v3750_v46  ;;  %v3834_v45 = vld [vmem:[#allocation4 + $0x638] ss:$24 sps:$4 sm:$0xff]   ;;  %v3842_v46 = vld [vmem:[#allocation4 + $0x60c] ss:$24 sps:$4 sm:$0xff]  }
  0xbb   :  { %2027 = vmatprep.subr.bf16.mxu1 %v3758_v47  ;;  %v3837_v47 = vld [vmem:[#allocation4 + $0x308] ss:$24 sps:$4 sm:$0xff]  }
  0xbd   :  { %1987 = vmatpush2.bf16.msra.mxu0 %v3753_v49  ;;  %v3845_v49 = vld [vmem:[#allocation4 + $0x5dc] ss:$24 sps:$4 sm:$0xff]  }
  0xbe   :  { %1988 = vmatprep.subr.bf16.mxu0 %v3761_v50  ;;  %2028 = vmatpush2.bf16.msra.mxu1 %v3756_v51  ;;  %v3840_v50 = vld [vmem:[#allocation4 + $0x608] ss:$24 sps:$4 sm:$0xff]   ;;  %v3848_v51 = vld [vmem:[#allocation4 + $0x8dc] ss:$24 sps:$4 sm:$0xff]  }
  0xbf   :  { %2029 = vmatprep.subr.bf16.mxu1 %v3764_v53  ;;  %v3843_v53 = vld [vmem:[#allocation4 + $0x5d8] ss:$24 sps:$4 sm:$0xff]  }
  0xc1   :  { %1989 = vmatpush2.bf16.msra.mxu0 %v3759_v54  ;;  %v3851_v54 = vld [vmem:[#allocation4 + $0x5ac] ss:$24 sps:$4 sm:$0xff]  }
  0xc2   :  { %1990 = vmatprep.subr.bf16.mxu0 %v3767_v55  ;;  %2030 = vmatpush2.bf16.msra.mxu1 %v3762_v56  ;;  %v3846_v55 = vld [vmem:[#allocation4 + $0x8d8] ss:$24 sps:$4 sm:$0xff]   ;;  %v3854_v56 = vld [vmem:[#allocation4 + $0x8ac] ss:$24 sps:$4 sm:$0xff]  }
  0xc3   :  { %2031 = vmatprep.subr.bf16.mxu1 %v3770_v57  ;;  %v3849_v57 = vld [vmem:[#allocation4 + $0x5a8] ss:$24 sps:$4 sm:$0xff]  }
  0xc5   :  { %1991 = vmatpush2.bf16.msra.mxu0 %v3765_v58  ;;  %v3857_v58 = vld [vmem:[#allocation4 + $0x57c] ss:$24 sps:$4 sm:$0xff]  }
  0xc6   :  { %1992 = vmatprep.subr.bf16.mxu0 %v3773_v59  ;;  %2032 = vmatpush2.bf16.msra.mxu1 %v3768_v60  ;;  %v3852_v59 = vld [vmem:[#allocation4 + $0x8a8] ss:$24 sps:$4 sm:$0xff]   ;;  %v3860_v60 = vld [vmem:[#allocation4 + $0x87c] ss:$24 sps:$4 sm:$0xff]  }
  0xc7   :  { %2033 = vmatprep.subr.bf16.mxu1 %v3776_v61  ;;  %v3855_v61 = vld [vmem:[#allocation4 + $0x578] ss:$24 sps:$4 sm:$0xff]  }
  0xc9   :  { %1993 = vmatpush2.bf16.msra.mxu0 %v3771_v62  ;;  %v3863_v62 = vld [vmem:[#allocation4 + $0x54c] ss:$24 sps:$4 sm:$0xff]  }
  0xca   :  { %1994 = vmatprep.subr.bf16.mxu0 %v3779_v63  ;;  %2034 = vmatpush2.bf16.msra.mxu1 %v3774_v0  ;;  %v3858_v63 = vld [vmem:[#allocation4 + $0x878] ss:$24 sps:$4 sm:$0xff]   ;;  %v3866_v0 = vld [vmem:[#allocation4 + $0x84c] ss:$24 sps:$4 sm:$0xff]  }
  0xcb   :  { %2035 = vmatprep.subr.bf16.mxu1 %v3782_v1  ;;  %v3861_v1 = vld [vmem:[#allocation4 + $0x548] ss:$24 sps:$4 sm:$0xff]  }
  0xcd   :  { %1995 = vmatpush2.bf16.msra.mxu0 %v3777_v2  ;;  %v3869_v2 = vld [vmem:[#allocation4 + $0x51c] ss:$24 sps:$4 sm:$0xff]  }
  0xce   :  { %1996 = vmatprep.subr.bf16.mxu0 %v3785_v3  ;;  %2036 = vmatpush2.bf16.msra.mxu1 %v3780_v4  ;;  %v3864_v3 = vld [vmem:[#allocation4 + $0x848] ss:$24 sps:$4 sm:$0xff]   ;;  %v3872_v4 = vld [vmem:[#allocation4 + $0x81c] ss:$24 sps:$4 sm:$0xff]  }
  0xcf   :  { %2037 = vmatprep.subr.bf16.mxu1 %v3788_v5  ;;  %v3867_v5 = vld [vmem:[#allocation4 + $0x518] ss:$24 sps:$4 sm:$0xff]  }
  0xd1   :  { %1997 = vmatpush2.bf16.msra.mxu0 %v3783_v6  ;;  %v3875_v6 = vld [vmem:[#allocation4 + $0x4ec] ss:$24 sps:$4 sm:$0xff]  }
  0xd2   :  { %1998 = vmatprep.subr.bf16.mxu0 %v3791_v8  ;;  %2038 = vmatpush2.bf16.msra.mxu1 %v3786_v9  ;;  %v3870_v8 = vld [vmem:[#allocation4 + $0x818] ss:$24 sps:$4 sm:$0xff]   ;;  %v3878_v9 = vld [vmem:[#allocation4 + $0x7ec] ss:$24 sps:$4 sm:$0xff]  }
  0xd3   :  { %2039 = vmatprep.subr.bf16.mxu1 %v3794_v12  ;;  %v3881_v12 = vld [vmem:[#allocation4 + $0x4bc] ss:$24 sps:$4 sm:$0xff]  }
  0xd5   :  { %1999 = vmatpush2.bf16.msra.mxu0 %v3789_v11  ;;  %v3873_v11 = vld [vmem:[#allocation4 + $0x4e8] ss:$24 sps:$4 sm:$0xff]  }
  0xd6   :  { %2050 = vmatprep.subr.bf16.mxu0 %v3797_v14  ;;  %2040 = vmatpush2.bf16.msra.mxu1 %v3792_v15  ;;  %v3884_v14 = vld [vmem:[#allocation4 + $0x7bc] ss:$24 sps:$4 sm:$0xff]   ;;  %v3879_v15 = vld [vmem:[#allocation4 + $0x4b8] ss:$24 sps:$4 sm:$0xff]  }
  0xd7   :  { %2091 = vmatprep.subr.bf16.mxu1 %v3800_v17  ;;  %v3887_v17 = vld [vmem:[#allocation4 + $0x48c] ss:$24 sps:$4 sm:$0xff]  }
  0xd8   :  { %2001 = vmatmul.mubr.bf16.vlgmr.msra.gmra.mxu0 %v4433_v16 }
  0xd9   :  { %2051 = vmatpush1.bf16.msra.mxu0 %v3795_v18  ;;  %2082 = vmatprep.mubr.bf16.mxu0 %v4420_v52  ;;  %v3882_v18 = vld [vmem:[#allocation4 + $0x7b8] ss:$24 sps:$4 sm:$0xff]  }
  0xda   :  { %2042 = vmatmul.mubr.bf16.vlgmr.msra.gmra.mxu1 %v4423_v7  ;;  %2052 = vmatprep.subr.bf16.mxu0 %v3803_v19  ;;  %v3890_v19 = vld [vmem:[#allocation4 + $0x78c] ss:$24 sps:$4 sm:$0xff]  }
  0xdb   :  { %2092 = vmatpush1.bf16.msra.mxu1 %v3798_v20  ;;  %2123 = vmatprep.mubr.bf16.mxu1 %v4430_v36  ;;  %v3885_v20 = vld [vmem:[#allocation4 + $0x488] ss:$24 sps:$4 sm:$0xff]  }
  0xdc   :  { %2093 = vmatprep.subr.bf16.mxu1 %v3806_v21  ;;  %v3893_v21 = vld [vmem:[#allocation4 + $0x164] ss:$24 sps:$4 sm:$0xff]  }
  0xdd   :  { %2053 = vmatpush1.bf16.msra.mxu0 %v3801_v22  ;;  %v3888_v22 = vld [vmem:[#allocation4 + $0x788] ss:$24 sps:$4 sm:$0xff]  }
  0xde   :  { %2054 = vmatprep.subr.bf16.mxu0 %v3809_v23  ;;  %v3896_v23 = vld [vmem:[#allocation4 + $0x464] ss:$24 sps:$4 sm:$0xff]  }
  0xdf   :  { %2094 = vmatpush1.bf16.msra.mxu1 %v3804_v24  ;;  %v3891_v24 = vld [vmem:[#allocation4 + $0x160] ss:$24 sps:$4 sm:$0xff]  }
  0xe0   :  { %2095 = vmatprep.subr.bf16.mxu1 %v3812_v25  ;;  %v3899_v25 = vld [vmem:[#allocation4 + $0x134] ss:$24 sps:$4 sm:$0xff]  }
  0xe1   :  { %2055 = vmatpush1.bf16.msra.mxu0 %v3807_v26  ;;  %v3894_v26 = vld [vmem:[#allocation4 + $0x460] ss:$24 sps:$4 sm:$0xff]  }
  0xe2   :  { %2056 = vmatprep.subr.bf16.mxu0 %v3815_v27  ;;  %v3902_v27 = vld [vmem:[#allocation4 + $0x434] ss:$24 sps:$4 sm:$0xff]  }
  0xe3   :  { %2096 = vmatpush1.bf16.msra.mxu1 %v3810_v28  ;;  %v3897_v28 = vld [vmem:[#allocation4 + $0x130] ss:$24 sps:$4 sm:$0xff]  }
  0xe4   :  { %2097 = vmatprep.subr.bf16.mxu1 %v3818_v29  ;;  %v3905_v29 = vld [vmem:[#allocation4 + $0x104] ss:$24 sps:$4 sm:$0xff]  }
  0xe5   :  { %2057 = vmatpush1.bf16.msra.mxu0 %v3813_v30  ;;  %v3900_v30 = vld [vmem:[#allocation4 + $0x430] ss:$24 sps:$4 sm:$0xff]  }
  0xe6   :  { %2058 = vmatprep.subr.bf16.mxu0 %v3821_v31  ;;  %v3908_v31 = vld [vmem:[#allocation4 + $0x404] ss:$24 sps:$4 sm:$0xff]  }
  0xe7   :  { %2098 = vmatpush1.bf16.msra.mxu1 %v3816_v32  ;;  %v3903_v32 = vld [vmem:[#allocation4 + $0x100] ss:$24 sps:$4 sm:$0xff]  }
  0xe8   :  { %2099 = vmatprep.subr.bf16.mxu1 %v3824_v33  ;;  %v3911_v33 = vld [vmem:[#allocation4 + $0xd4] ss:$24 sps:$4 sm:$0xff]  }
  0xe9   :  { %2059 = vmatpush1.bf16.msra.mxu0 %v3819_v34  ;;  %v3906_v34 = vld [vmem:[#allocation4 + $0x400] ss:$24 sps:$4 sm:$0xff]  }
  0xea   :  { %2060 = vmatprep.subr.bf16.mxu0 %v3827_v35  ;;  %v3914_v35 = vld [vmem:[#allocation4 + $0x3d4] ss:$24 sps:$4 sm:$0xff]  }
  0xeb   :  { %2100 = vmatpush1.bf16.msra.mxu1 %v3822_v37  ;;  %v3917_v37 = vld [vmem:[#allocation4 + $0xa4] ss:$24 sps:$4 sm:$0xff]  }
  0xec   :  { %2101 = vmatprep.subr.bf16.mxu1 %v3830_v38  ;;  %v3912_v38 = vld [vmem:[#allocation4 + $0x3d0] ss:$24 sps:$4 sm:$0xff]  }
  0xed   :  { %2061 = vmatpush1.bf16.msra.mxu0 %v3825_v39  ;;  %v3920_v39 = vld [vmem:[#allocation4 + $0x3a4] ss:$24 sps:$4 sm:$0xff]  }
  0xee   :  { %2062 = vmatprep.subr.bf16.mxu0 %v3833_v40  ;;  %v3923_v40 = vld [vmem:[#allocation4 + $0x74] ss:$24 sps:$4 sm:$0xff]  }
  0xef   :  { %2102 = vmatpush1.bf16.msra.mxu1 %v3828_v41  ;;  %v3918_v41 = vld [vmem:[#allocation4 + $0x3a0] ss:$24 sps:$4 sm:$0xff]  }
  0xf0   :  { %2103 = vmatprep.subr.bf16.mxu1 %v3836_v42  ;;  %v3926_v42 = vld [vmem:[#allocation4 + $0x374] ss:$24 sps:$4 sm:$0xff]  }
  0xf1   :  { %2063 = vmatpush1.bf16.msra.mxu0 %v3831_v43  ;;  %v3921_v43 = vld [vmem:[#allocation4 + $0x70] ss:$24 sps:$4 sm:$0xff]  }
  0xf2   :  { %2064 = vmatprep.subr.bf16.mxu0 %v3839_v44  ;;  %v3929_v44 = vld [vmem:[#allocation4 + $0x44] ss:$24 sps:$4 sm:$0xff]  }
  0xf3   :  { %2104 = vmatpush1.bf16.msra.mxu1 %v3834_v45  ;;  %v3924_v45 = vld [vmem:[#allocation4 + $0x370] ss:$24 sps:$4 sm:$0xff]  }
  0xf4   :  { %2105 = vmatprep.subr.bf16.mxu1 %v3842_v46  ;;  %v3932_v46 = vld [vmem:[#allocation4 + $0x344] ss:$24 sps:$4 sm:$0xff]  }
  0xf5   :  { %2065 = vmatpush1.bf16.msra.mxu0 %v3837_v47  ;;  %v3927_v47 = vld [vmem:[#allocation4 + $0x40] ss:$24 sps:$4 sm:$0xff]  }
  0xf6   :  { %2066 = vmatprep.subr.bf16.mxu0 %v3845_v49  ;;  %v3935_v49 = vld [vmem:[#allocation4 + $0x14] ss:$24 sps:$4 sm:$0xff]  }
  0xf7   :  { %2106 = vmatpush1.bf16.msra.mxu1 %v3840_v50  ;;  %v3930_v50 = vld [vmem:[#allocation4 + $0x340] ss:$24 sps:$4 sm:$0xff]  }
  0xf8   :  { %2107 = vmatprep.subr.bf16.mxu1 %v3848_v51  ;;  %v3938_v51 = vld [vmem:[#allocation4 + $0x314] ss:$24 sps:$4 sm:$0xff]  }
  0xf9   :  { %2067 = vmatpush2.bf16.msra.mxu0 %v3843_v53  ;;  %v3933_v53 = vld [vmem:[#allocation4 + $0x10] ss:$24 sps:$4 sm:$0xff]  }
  0xfa   :  { %2068 = vmatprep.subr.bf16.mxu0 %v3851_v54  ;;  %v3941_v54 = vld [vmem:[#allocation4 + $0x2e4] ss:$24 sps:$4 sm:$0xff]  }
  0xfb   :  { %2108 = vmatpush2.bf16.msra.mxu1 %v3846_v55  ;;  %v3936_v55 = vld [vmem:[#allocation4 + $0x310] ss:$24 sps:$4 sm:$0xff]  }
  0xfc   :  { %2109 = vmatprep.subr.bf16.mxu1 %v3854_v56  ;;  %v3944_v56 = vld [vmem:[#allocation4 + $0x5e4] ss:$24 sps:$4 sm:$0xff]  }
  0xfd   :  { %2069 = vmatpush2.bf16.msra.mxu0 %v3849_v57  ;;  %v3939_v57 = vld [vmem:[#allocation4 + $0x2e0] ss:$24 sps:$4 sm:$0xff]  }
  0xfe   :  { %2070 = vmatprep.subr.bf16.mxu0 %v3857_v58  ;;  %v3947_v58 = vld [vmem:[#allocation4 + $0x2b4] ss:$24 sps:$4 sm:$0xff]  }
  0xff   :  { %2110 = vmatpush2.bf16.msra.mxu1 %v3852_v59  ;;  %v3942_v59 = vld [vmem:[#allocation4 + $0x5e0] ss:$24 sps:$4 sm:$0xff]  }
 0x100   :  { %2111 = vmatprep.subr.bf16.mxu1 %v3860_v60  ;;  %v3950_v60 = vld [vmem:[#allocation4 + $0x5b4] ss:$24 sps:$4 sm:$0xff]  }
 0x101   :  { %2071 = vmatpush2.bf16.msra.mxu0 %v3855_v61  ;;  %v3945_v61 = vld [vmem:[#allocation4 + $0x2b0] ss:$24 sps:$4 sm:$0xff]  }
 0x102   :  { %2072 = vmatprep.subr.bf16.mxu0 %v3863_v62  ;;  %v3948_v62 = vld [vmem:[#allocation4 + $0x5b0] ss:$24 sps:$4 sm:$0xff]  }
 0x103   :  { %2112 = vmatpush2.bf16.msra.mxu1 %v3858_v63  ;;  %v3953_v63 = vld [vmem:[#allocation4 + $0x284] ss:$24 sps:$4 sm:$0xff]  }
 0x104   :  { %2113 = vmatprep.subr.bf16.mxu1 %v3866_v0  ;;  %v3956_v0 = vld [vmem:[#allocation4 + $0x584] ss:$24 sps:$4 sm:$0xff]  }
 0x105   :  { %2073 = vmatpush2.bf16.msra.mxu0 %v3861_v1  ;;  %v3951_v1 = vld [vmem:[#allocation4 + $0x280] ss:$24 sps:$4 sm:$0xff]  }
 0x106   :  { %2074 = vmatprep.subr.bf16.mxu0 %v3869_v2  ;;  %v3954_v2 = vld [vmem:[#allocation4 + $0x580] ss:$24 sps:$4 sm:$0xff]  }
 0x107   :  { %2114 = vmatpush2.bf16.msra.mxu1 %v3864_v3  ;;  %v3959_v3 = vld [vmem:[#allocation4 + $0x254] ss:$24 sps:$4 sm:$0xff]  }
 0x108   :  { %2115 = vmatprep.subr.bf16.mxu1 %v3872_v4  ;;  %v3962_v4 = vld [vmem:[#allocation4 + $0x554] ss:$24 sps:$4 sm:$0xff]  }
 0x109   :  { %2075 = vmatpush2.bf16.msra.mxu0 %v3867_v5  ;;  %v3957_v5 = vld [vmem:[#allocation4 + $0x250] ss:$24 sps:$4 sm:$0xff]  }
 0x10a   :  { %2076 = vmatprep.subr.bf16.mxu0 %v3875_v6  ;;  %v3960_v6 = vld [vmem:[#allocation4 + $0x550] ss:$24 sps:$4 sm:$0xff]  }
 0x10b   :  { %2116 = vmatpush2.bf16.msra.mxu1 %v3870_v8  ;;  %v3965_v8 = vld [vmem:[#allocation4 + $0x224] ss:$24 sps:$4 sm:$0xff]  }
 0x10c   :  { %2117 = vmatprep.subr.bf16.mxu1 %v3878_v9  ;;  %v3968_v9 = vld [vmem:[#allocation4 + $0x524] ss:$24 sps:$4 sm:$0xff]  }
 0x10d   :  { %2077 = vmatpush2.bf16.msra.mxu0 %v3873_v11  ;;  %v3963_v11 = vld [vmem:[#allocation4 + $0x220] ss:$24 sps:$4 sm:$0xff]  }
 0x10e   :  { %2078 = vmatprep.subr.bf16.mxu0 %v3881_v12  ;;  %v3966_v12 = vld [vmem:[#allocation4 + $0x520] ss:$24 sps:$4 sm:$0xff]  }
 0x10f   :  { %2118 = vmatpush2.bf16.msra.mxu1 %v3876_v13  ;;  %v3971_v13 = vld [vmem:[#allocation4 + $0x1f4] ss:$24 sps:$4 sm:$0xff]  }
 0x110   :  { %2119 = vmatprep.subr.bf16.mxu1 %v3884_v14  ;;  %v3974_v14 = vld [vmem:[#allocation4 + $0x4f4] ss:$24 sps:$4 sm:$0xff]  }
 0x111   :  { %2079 = vmatpush2.bf16.msra.mxu0 %v3879_v15  ;;  %v3969_v15 = vld [vmem:[#allocation4 + $0x1f0] ss:$24 sps:$4 sm:$0xff]  }
 0x112   :  { %2080 = vmatprep.subr.bf16.mxu0 %v3887_v17  ;;  %v3977_v17 = vld [vmem:[#allocation4 + $0x1c4] ss:$24 sps:$4 sm:$0xff]  }
 0x113   :  { %2120 = vmatpush2.bf16.msra.mxu1 %v3882_v18  ;;  %v3972_v18 = vld [vmem:[#allocation4 + $0x4f0] ss:$24 sps:$4 sm:$0xff]  }
 0x114   :  { %2121 = vmatprep.subr.bf16.mxu1 %v3890_v19  ;;  %v3980_v19 = vld [vmem:[#allocation4 + $0x4c4] ss:$24 sps:$4 sm:$0xff]  }
 0x115   :  { %2081 = vmatpush2.bf16.msra.mxu0 %v3885_v20  ;;  %v3975_v20 = vld [vmem:[#allocation4 + $0x1c0] ss:$24 sps:$4 sm:$0xff]  }
 0x116   :  { %2132 = vmatprep.subr.bf16.mxu0 %v3893_v21  ;;  %v3983_v21 = vld [vmem:[#allocation4 + $0x194] ss:$24 sps:$4 sm:$0xff]  }
 0x117   :  { %2122 = vmatpush2.bf16.msra.mxu1 %v3888_v22  ;;  %v3978_v22 = vld [vmem:[#allocation4 + $0x4c0] ss:$24 sps:$4 sm:$0xff]  }
 0x118   :  { %2083 = vmatmul.mubr.bf16.vlgmr.msra.gmra.mxu0 %v4425_v10  ;;  %2173 = vmatprep.subr.bf16.mxu1 %v3896_v23  ;;  %v3986_v23 = vld [vmem:[#allocation4 + $0x494] ss:$24 sps:$4 sm:$0xff]  }
 0x119   :  { %2133 = vmatpush1.bf16.msra.mxu0 %v3891_v24  ;;  %2164 = vmatprep.mubr.bf16.mxu0 %v4417_v48  ;;  %v3909_v48 = vld [vmem:[#allocation4 + $0xd0] ss:$24 sps:$4 sm:$0xff]  }
 0x11a   :  { %2124 = vmatmul.mubr.bf16.vlgmr.msra.gmra.mxu1 %v4433_v16  ;;  %2134 = vmatprep.subr.bf16.mxu0 %v3899_v25  ;;  %v3981_v24 = vld [vmem:[#allocation4 + $0x190] ss:$24 sps:$4 sm:$0xff]   ;;  %v3989_v25 = vld [vmem:[#allocation4 + $0x764] ss:$24 sps:$4 sm:$0xff]  }
 0x11b   :  { %2174 = vmatpush1.bf16.msra.mxu1 %v3894_v26  ;;  %2205 = vmatprep.mubr.bf16.mxu1 %v4420_v52  ;;  %v3915_v52 = vld [vmem:[#allocation4 + $0xa0] ss:$24 sps:$4 sm:$0xff]   ;;  %v3984_v26 = vld [vmem:[#allocation4 + $0x490] ss:$24 sps:$4 sm:$0xff]  }
 0x11c   :  { %2175 = vmatprep.subr.bf16.mxu1 %v3902_v27  ;;  %v3998_v27 = vld [vmem:[#allocation7 + $0x74] ss:$8 sps:$4 sm:$0xff]  }
 0x11d   :  { %2135 = vmatpush1.bf16.msra.mxu0 %v3897_v28  ;;  %v3987_v28 = vld [vmem:[#allocation4 + $0x760] ss:$24 sps:$4 sm:$0xff]  }
 0x11e   :  { %2136 = vmatprep.subr.bf16.mxu0 %v3905_v29  ;;  %v3992_v29 = vld [vmem:[#allocation4 + $0x734] ss:$24 sps:$4 sm:$0xff]  }
 0x11f   :  { %2176 = vmatpush1.bf16.msra.mxu1 %v3900_v30  ;;  %v3996_v30 = vld [vmem:[#allocation7 + $0x70] ss:$8 sps:$4 sm:$0xff]  }
 0x120   :  { %2177 = vmatprep.subr.bf16.mxu1 %v3908_v31 }
 0x121   :  { %2137 = vmatpush1.bf16.msra.mxu0 %v3903_v32  ;;  %v4004_v32 = vld [vmem:[#allocation7 + $0x64] ss:$8 sps:$4 sm:$0xff]  }
 0x122   :  { %2138 = vmatprep.subr.bf16.mxu0 %v3911_v33  ;;  %v3990_v33 = vld [vmem:[#allocation4 + $0x730] ss:$24 sps:$4 sm:$0xff]  }
 0x123   :  { %2178 = vmatpush1.bf16.msra.mxu1 %v3906_v34 }
 0x124   :  { %2179 = vmatprep.subr.bf16.mxu1 %v3914_v35 }
 0x125   :  { %2139 = vmatpush1.bf16.msra.mxu0 %v3909_v48  ;;  %v3995_v48 = vld [vmem:[#allocation4 + $0x704] ss:$24 sps:$4 sm:$0xff]  }
 0x126   :  { %2140 = vmatprep.subr.bf16.mxu0 %v3917_v37  ;;  %v4002_v37 = vld [vmem:[#allocation7 + $0x60] ss:$8 sps:$4 sm:$0xff]  }
 0x127   :  { %2180 = vmatpush1.bf16.msra.mxu1 %v3912_v38 }
 0x128   :  { %2181 = vmatprep.subr.bf16.mxu1 %v3920_v39 }
 0x129   :  { %2141 = vmatpush1.bf16.msra.mxu0 %v3915_v52  ;;  %v3993_v52 = vld [vmem:[#allocation4 + $0x700] ss:$24 sps:$4 sm:$0xff]  }
 0x12a   :  { %2142 = vmatprep.subr.bf16.mxu0 %v3923_v40 }
 0x12b   :  { %2182 = vmatpush1.bf16.msra.mxu1 %v3918_v41 }
 0x12c   :  { %2183 = vmatprep.subr.bf16.mxu1 %v3926_v42  ;;  %v4008_v42 = vld [vmem:[#allocation7 + $0x50] ss:$8 sps:$4 sm:$0xff]  }
 0x12d   :  { %2143 = vmatpush1.bf16.msra.mxu0 %v3921_v43  ;;  %v4016_v43 = vld [vmem:[#allocation7 + $0x44] ss:$8 sps:$4 sm:$0xff]  }
 0x12e   :  { %2144 = vmatprep.subr.bf16.mxu0 %v3929_v44  ;;  %v3999_v44 = vld [vmem:[#allocation4 + $0x6d0] ss:$24 sps:$4 sm:$0xff]  }
 0x12f   :  { %2184 = vmatpush1.bf16.msra.mxu1 %v3924_v45  ;;  %v4007_v45 = vld [vmem:[#allocation4 + $0x6a4] ss:$24 sps:$4 sm:$0xff]  }
 0x130   :  { %2185 = vmatprep.subr.bf16.mxu1 %v3932_v46  ;;  %v4014_v46 = vld [vmem:[#allocation7 + $0x40] ss:$8 sps:$4 sm:$0xff]  }
 0x131   :  { %2145 = vmatpush1.bf16.msra.mxu0 %v3927_v47  ;;  %v4022_v47 = vld [vmem:[#allocation7 + $0x34] ss:$8 sps:$4 sm:$0xff]  }
 0x132   :  { %2146 = vmatprep.subr.bf16.mxu0 %v3935_v49  ;;  %v4005_v49 = vld [vmem:[#allocation4 + $0x6a0] ss:$24 sps:$4 sm:$0xff]  }
 0x133   :  { %2186 = vmatpush1.bf16.msra.mxu1 %v3930_v50  ;;  %v4013_v50 = vld [vmem:[#allocation4 + $0x674] ss:$24 sps:$4 sm:$0xff]  }
 0x134   :  { %2187 = vmatprep.subr.bf16.mxu1 %v3938_v51  ;;  %v4020_v51 = vld [vmem:[#allocation7 + $0x30] ss:$8 sps:$4 sm:$0xff]  }
 0x135   :  { %2147 = vmatpush1.bf16.msra.mxu0 %v3933_v53  ;;  %v4028_v53 = vld [vmem:[#allocation7 + $0x24] ss:$8 sps:$4 sm:$0xff]  }
 0x136   :  { %2148 = vmatprep.subr.bf16.mxu0 %v3941_v54  ;;  %v4011_v54 = vld [vmem:[#allocation4 + $0x670] ss:$24 sps:$4 sm:$0xff]  }
 0x137   :  { %2188 = vmatpush1.bf16.msra.mxu1 %v3936_v55  ;;  %v4019_v55 = vld [vmem:[#allocation4 + $0x644] ss:$24 sps:$4 sm:$0xff]  }
 0x138   :  { %2189 = vmatprep.subr.bf16.mxu1 %v3944_v56  ;;  %v4026_v56 = vld [vmem:[#allocation7 + $0x20] ss:$8 sps:$4 sm:$0xff]  }
 0x139   :  { %2149 = vmatpush2.bf16.msra.mxu0 %v3939_v57  ;;  %v4034_v57 = vld [vmem:[#allocation7 + $0x14] ss:$8 sps:$4 sm:$0xff]  }
 0x13a   :  { %2150 = vmatprep.subr.bf16.mxu0 %v3947_v58  ;;  %v4017_v58 = vld [vmem:[#allocation4 + $0x640] ss:$24 sps:$4 sm:$0xff]  }
 0x13b   :  { %2190 = vmatpush2.bf16.msra.mxu1 %v3942_v59  ;;  %v4025_v59 = vld [vmem:[#allocation4 + $0x614] ss:$24 sps:$4 sm:$0xff]  }
 0x13c   :  { %2191 = vmatprep.subr.bf16.mxu1 %v3950_v60  ;;  %v4032_v60 = vld [vmem:[#allocation7 + $0x10] ss:$8 sps:$4 sm:$0xff]  }
 0x13d   :  { %2151 = vmatpush2.bf16.msra.mxu0 %v3945_v61  ;;  %v4040_v61 = vld [vmem:[#allocation7 + $0x4] ss:$8 sps:$4 sm:$0xff]  }
 0x13e   :  { %2152 = vmatprep.subr.bf16.mxu0 %v3953_v63  ;;  %v4031_v63 = vld [vmem:[#allocation4 + $0x8e4] ss:$24 sps:$4 sm:$0xff]  }
 0x13f   :  { %2192 = vmatpush2.bf16.msra.mxu1 %v3948_v62  ;;  %v4023_v62 = vld [vmem:[#allocation4 + $0x610] ss:$24 sps:$4 sm:$0xff]  }
 0x140   :  { %2193 = vmatprep.subr.bf16.mxu1 %v3956_v0  ;;  %v4038_v0 = vld [vmem:[#allocation7] ss:$8 sps:$4 sm:$0xff]  }
 0x141   :  { %2153 = vmatpush2.bf16.msra.mxu0 %v3951_v1  ;;  %v4046_v1 = vld [vmem:[#allocation7 + $0xf4] ss:$8 sps:$4 sm:$0xff]  }
 0x142   :  { %2154 = vmatprep.subr.bf16.mxu0 %v3959_v3  ;;  %v4037_v3 = vld [vmem:[#allocation4 + $0x8b4] ss:$24 sps:$4 sm:$0xff]  }
 0x143   :  { %2194 = vmatpush2.bf16.msra.mxu1 %v3954_v2  ;;  %v4029_v2 = vld [vmem:[#allocation4 + $0x8e0] ss:$24 sps:$4 sm:$0xff]  }
 0x144   :  { %2195 = vmatprep.subr.bf16.mxu1 %v3962_v4  ;;  %v4044_v4 = vld [vmem:[#allocation7 + $0xf0] ss:$8 sps:$4 sm:$0xff]  }
 0x145   :  { %2155 = vmatpush2.bf16.msra.mxu0 %v3957_v5  ;;  %v4052_v5 = vld [vmem:[#allocation7 + $0xe4] ss:$8 sps:$4 sm:$0xff]  }
 0x146   :  { %2156 = vmatprep.subr.bf16.mxu0 %v3965_v8  ;;  %v4043_v8 = vld [vmem:[#allocation4 + $0x884] ss:$24 sps:$4 sm:$0xff]  }
 0x147   :  { %2196 = vmatpush2.bf16.msra.mxu1 %v3960_v6  ;;  %v4035_v6 = vld [vmem:[#allocation4 + $0x8b0] ss:$24 sps:$4 sm:$0xff]  }
 0x148   :  { %2197 = vmatprep.subr.bf16.mxu1 %v3968_v9  ;;  %v4050_v9 = vld [vmem:[#allocation7 + $0xe0] ss:$8 sps:$4 sm:$0xff]  }
 0x149   :  { %2157 = vmatpush2.bf16.msra.mxu0 %v3963_v11  ;;  %v4058_v11 = vld [vmem:[#allocation7 + $0xd4] ss:$8 sps:$4 sm:$0xff]  }
 0x14a   :  { %2158 = vmatprep.subr.bf16.mxu0 %v3971_v13  ;;  %v4049_v13 = vld [vmem:[#allocation4 + $0x854] ss:$24 sps:$4 sm:$0xff]  }
 0x14b   :  { %2198 = vmatpush2.bf16.msra.mxu1 %v3966_v12  ;;  %v4041_v12 = vld [vmem:[#allocation4 + $0x880] ss:$24 sps:$4 sm:$0xff]  }
 0x14c   :  { %2199 = vmatprep.subr.bf16.mxu1 %v3974_v14  ;;  %v4056_v14 = vld [vmem:[#allocation7 + $0xd0] ss:$8 sps:$4 sm:$0xff]  }
 0x14d   :  { %2159 = vmatpush2.bf16.msra.mxu0 %v3969_v15  ;;  %v4064_v15 = vld [vmem:[#allocation7 + $0xc4] ss:$8 sps:$4 sm:$0xff]  }
 0x14e   :  { %2160 = vmatprep.subr.bf16.mxu0 %v3977_v17  ;;  %v4047_v17 = vld [vmem:[#allocation4 + $0x850] ss:$24 sps:$4 sm:$0xff]  }
 0x14f   :  { %2200 = vmatpush2.bf16.msra.mxu1 %v3972_v18  ;;  %v4055_v18 = vld [vmem:[#allocation4 + $0x824] ss:$24 sps:$4 sm:$0xff]  }
 0x150   :  { %2201 = vmatprep.subr.bf16.mxu1 %v3980_v19  ;;  %v416_v19 = vlaneseq }
 0x151   :  { %2161 = vmatpush2.bf16.msra.mxu0 %v3975_v20  ;;  %v4062_v20 = vld [vmem:[#allocation7 + $0xc0] ss:$8 sps:$4 sm:$0xff]  }
 0x152   :  { %2162 = vmatprep.subr.bf16.mxu0 %v3983_v21  ;;  %v4070_v21 = vld [vmem:[#allocation7 + $0xb4] ss:$8 sps:$4 sm:$0xff]  }
 0x153   :  { %2202 = vmatpush2.bf16.msra.mxu1 %v3978_v22  ;;  %v4053_v22 = vld [vmem:[#allocation4 + $0x820] ss:$24 sps:$4 sm:$0xff]  }
 0x154   :  { %2203 = vmatprep.subr.bf16.mxu1 %v3986_v23  ;;  %v4061_v23 = vld [vmem:[#allocation4 + $0x7f4] ss:$24 sps:$4 sm:$0xff]  }
 0x155   :  { %2163 = vmatpush2.bf16.msra.mxu0 %v3981_v24  ;;  %v4454_v24 = vshrl.u32 %v416_v19, 7  ;;  %v4106_v19 = vld [vmem:[#allocation7 + $0x104] ss:$8 sps:$4 sm:$0xff]  }
 0x156   :  { %2214 = vmatprep.subr.bf16.mxu0 %v3989_v25  ;;  %v4068_v25 = vld [vmem:[#allocation7 + $0xb0] ss:$8 sps:$4 sm:$0xff]  }
 0x157   :  { %2204 = vmatpush2.bf16.msra.mxu1 %v3984_v26  ;;  %v4076_v26 = vld [vmem:[#allocation7 + $0xa4] ss:$8 sps:$4 sm:$0xff]  }
 0x158   :  { %v4443_v31 = vpop.f32.mrf.mxu0  ;;  %2165 = vmatmul.mubr.bf16.vlgmr.msra.gmra.mxu0 %v4423_v7  ;;  %2855 = vmatprep.subr.bf16.mxu1 %v3998_v27  ;;  %v4010_v7 = vld [vmem:[#allocation7 + $0x54] ss:$8 sps:$4 sm:$0xff]   ;;  %v4059_v27 = vld [vmem:[#allocation4 + $0x7f0] ss:$24 sps:$4 sm:$0xff]  }
 0x159   :  { %2215 = vmatpush1.bf16.msra.mxu0 %v3987_v28  ;;  %2246 = vmatprep.mubr.bf16.mxu0 %v4430_v36  ;;  %v4449_v35 = vpop.f32.mrf.mxu1  ;;  %v4001_v36 = vld [vmem:[#allocation4 + $0x6d4] ss:$24 sps:$4 sm:$0xff]   ;;  %v4067_v28 = vld [vmem:[#allocation4 + $0x7c4] ss:$24 sps:$4 sm:$0xff]  }
 0x15a   :  { %v4447_v34 = vpop.f32.mrf.mxu0  ;;  %2206 = vmatmul.mubr.bf16.vlgmr.msra.gmra.mxu1 %v4425_v10  ;;  %2216 = vmatprep.subr.bf16.mxu0 %v3992_v29  ;;  %v418_v29 = vsub.s32 0, %v4454_v24 }
 0x15b   :  { %2856 = vmatpush1.bf16.msra.mxu1 %v3996_v30  ;;  %v4452_v39 = vpop.f32.mrf.mxu1  ;;  %v4074_v30 = vld [vmem:[#allocation7 + $0xa0] ss:$8 sps:$4 sm:$0xff]  }
 0x15c   :  { %v1924_v38 = vpop.f32.mrf.mxu0  ;;  %2857 = vmatprep.subr.bf16.mxu1 %v4004_v32  ;;  %v4457_v32 = vld [vmem:[#allocation6] sm:$0x3f] }
 0x15d   :  { %2217 = vmatpush1.bf16.msra.mxu0 %v3990_v33  ;;  %v1965_v41 = vpop.f32.mrf.mxu1  ;;  %v4079_v33 = vld [vmem:[#allocation7 + $0x94] ss:$8 sps:$4 sm:$0xff]   ;;  %v4073_v38 = vld [vmem:[#allocation4 + $0x794] ss:$24 sps:$4 sm:$0xff]  }
 0x15e   :  { %v1925_v40 = vpop.f32.mrf.mxu0  ;;  %2218 = vmatprep.subr.bf16.mxu0 %v3995_v48  ;;  %v422_v48 = vsub.s32 1, %v4454_v24  ;;  %v4071_v41 = vld [vmem:[#allocation4 + $0x790] ss:$24 sps:$4 sm:$0xff]  }
 0x15f   :  { %2858 = vmatpush1.bf16.msra.mxu1 %v4002_v37  ;;  %v1966_v10 = vpop.f32.mrf.mxu1  ;;  %v4065_v37 = vld [vmem:[#allocation4 + $0x7c0] ss:$24 sps:$4 sm:$0xff]   ;;  %v4082_v40 = vld [vmem:[#allocation7 + $0x84] ss:$8 sps:$4 sm:$0xff]  }
 0x160   :  { %2859 = vmatprep.subr.bf16.mxu1 %v4010_v7  ;;  %v419_v7 = vrot.slane %v4457_v32, %v418_v29  ;;  %v4080_v10 = vld [vmem:[#allocation7 + $0x80] ss:$8 sps:$4 sm:$0xff]  }
 0x161   :  { %2219 = vmatpush1.bf16.msra.mxu0 %v3993_v52  ;;  %v4077_v52 = vld [vmem:[#allocation7 + $0x90] ss:$8 sps:$4 sm:$0xff]  }
 0x162   :  { %2220 = vmatprep.subr.bf16.mxu0 %v4001_v36  ;;  %v423_v36 = vrot.slane %v4457_v32, %v422_v48 }
 0x163   :  { %2860 = vmatpush1.bf16.msra.mxu1 %v4008_v42  ;;  %v4085_v42 = vld [vmem:[#allocation7 + $0x174] ss:$8 sps:$4 sm:$0xff]  }
 0x164   :  { %2861 = vmatprep.subr.bf16.mxu1 %v4016_v43  ;;  %v1921_v43 = vadd.f32 %v4443_v31, %v419_v7  ;;  %v4086_v31 = vld [vmem:[#allocation7 + $0x160] ss:$8 sps:$4 sm:$0xff]  }
 0x165   :  { %2221 = vmatpush1.bf16.msra.mxu0 %v3999_v44  ;;  %v1923_v44 = vadd.f32 %v4447_v34, %v423_v36  ;;  %v4152_v7 = vld [vmem:[#allocation7 + $0x200] ss:$8 sps:$4 sm:$0xff]   ;;  %v4118_v36 = vld [vmem:[#allocation7 + $0x1c4] ss:$8 sps:$4 sm:$0xff]  }
 0x166   :  { %2222 = vmatprep.subr.bf16.mxu0 %v4007_v45  ;;  %v4083_v45 = vld [vmem:[#allocation7 + $0x170] ss:$8 sps:$4 sm:$0xff]  }
 0x167   :  { %2862 = vmatpush1.bf16.msra.mxu1 %v4014_v46  ;;  %v4088_v46 = vld [vmem:[#allocation7 + $0x164] ss:$8 sps:$4 sm:$0xff]  }
 0x168   :  { %2863 = vmatprep.subr.bf16.mxu1 %v4022_v47  ;;  %v1962_v47 = vadd.f32 %v4449_v35, %v1921_v43  ;;  %v4116_v43 = vld [vmem:[#allocation7 + $0x1c0] ss:$8 sps:$4 sm:$0xff]  }
 0x169   :  { %2223 = vmatpush1.bf16.msra.mxu0 %v4005_v49 }
 0x16a   :  { %2224 = vmatprep.subr.bf16.mxu0 %v4013_v50  ;;  %v1964_v50 = vadd.f32 %v4452_v39, %v1923_v44  ;;  %v4158_v44 = vld [vmem:[#allocation7 + $0x2e0] ss:$8 sps:$4 sm:$0xff]  }
 0x16b   :  { %2864 = vmatpush1.bf16.msra.mxu1 %v4020_v51 }
 0x16c   :  { %2865 = vmatprep.subr.bf16.mxu1 %v4028_v53 }
 0x16d   :  { %2225 = vmatpush1.bf16.msra.mxu0 %v4011_v54  ;;  %v4091_v54 = vld [vmem:[#allocation7 + $0x154] ss:$8 sps:$4 sm:$0xff]  }
 0x16e   :  { %2226 = vmatprep.subr.bf16.mxu0 %v4019_v55 }
 0x16f   :  { %2866 = vmatpush1.bf16.msra.mxu1 %v4026_v56 }
 0x170   :  { %2867 = vmatprep.subr.bf16.mxu1 %v4034_v57 }
 0x171   :  { %2227 = vmatpush1.bf16.msra.mxu0 %v4017_v58 }
 0x172   :  { %2228 = vmatprep.subr.bf16.mxu0 %v4025_v59  ;;  %v4089_v59 = vld [vmem:[#allocation7 + $0x150] ss:$8 sps:$4 sm:$0xff]  }
 0x173   :  { %2868 = vmatpush1.bf16.msra.mxu1 %v4032_v60 }
 0x174   :  { %2869 = vmatprep.subr.bf16.mxu1 %v4040_v61  ;;  %v4133_v61 = vld [vmem:[#allocation7 + $0x274] ss:$8 sps:$4 sm:$0xff]  }
 0x175   :  { %2229 = vmatpush1.bf16.msra.mxu0 %v4023_v62 }
 0x176   :  { %2230 = vmatprep.subr.bf16.mxu0 %v4031_v63  ;;  %v4131_v63 = vld [vmem:[#allocation7 + $0x270] ss:$8 sps:$4 sm:$0xff]  }
 0x177   :  { %2870 = vmatpush1.bf16.msra.mxu1 %v4038_v0 }
 0x178   :  { %2871 = vmatprep.subr.bf16.mxu1 %v4046_v1 }
 0x179   :  { %2231 = vmatpush2.bf16.msra.mxu0 %v4029_v2  ;;  %v4136_v2 = vld [vmem:[#allocation7 + $0x264] ss:$8 sps:$4 sm:$0xff]  }
 0x17a   :  { %2232 = vmatprep.subr.bf16.mxu0 %v4037_v3  ;;  %v4092_v3 = vld [vmem:[#allocation7 + $0x140] ss:$8 sps:$4 sm:$0xff]  }
 0x17b   :  { %2872 = vmatpush2.bf16.msra.mxu1 %v4044_v4  ;;  %v4097_v4 = vld [vmem:[#allocation7 + $0x134] ss:$8 sps:$4 sm:$0xff]  }
 0x17c   :  { %2873 = vmatprep.subr.bf16.mxu1 %v4052_v5  ;;  %v4134_v5 = vld [vmem:[#allocation7 + $0x260] ss:$8 sps:$4 sm:$0xff]  }
 0x17d   :  { %2233 = vmatpush2.bf16.msra.mxu0 %v4035_v6  ;;  %v4139_v6 = vld [vmem:[#allocation7 + $0x254] ss:$8 sps:$4 sm:$0xff]  }
 0x17e   :  { %2234 = vmatprep.subr.bf16.mxu0 %v4043_v8  ;;  %v4095_v8 = vld [vmem:[#allocation7 + $0x130] ss:$8 sps:$4 sm:$0xff]  }
 0x17f   :  { %2874 = vmatpush2.bf16.msra.mxu1 %v4050_v9  ;;  %v4100_v9 = vld [vmem:[#allocation7 + $0x124] ss:$8 sps:$4 sm:$0xff]  }
 0x180   :  { %2875 = vmatprep.subr.bf16.mxu1 %v4058_v11  ;;  %v4137_v11 = vld [vmem:[#allocation7 + $0x250] ss:$8 sps:$4 sm:$0xff]  }
 0x181   :  { %2235 = vmatpush2.bf16.msra.mxu0 %v4041_v12  ;;  %v4142_v12 = vld [vmem:[#allocation7 + $0x244] ss:$8 sps:$4 sm:$0xff]  }
 0x182   :  { %2236 = vmatprep.subr.bf16.mxu0 %v4049_v13  ;;  %v4098_v13 = vld [vmem:[#allocation7 + $0x120] ss:$8 sps:$4 sm:$0xff]  }
 0x183   :  { %2876 = vmatpush2.bf16.msra.mxu1 %v4056_v14  ;;  %v4103_v14 = vld [vmem:[#allocation7 + $0x114] ss:$8 sps:$4 sm:$0xff]  }
 0x184   :  { %2877 = vmatprep.subr.bf16.mxu1 %v4064_v15  ;;  %v4140_v15 = vld [vmem:[#allocation7 + $0x240] ss:$8 sps:$4 sm:$0xff]  }
 0x185   :  { %2237 = vmatpush2.bf16.msra.mxu0 %v4047_v17  ;;  %v4145_v17 = vld [vmem:[#allocation7 + $0x234] ss:$8 sps:$4 sm:$0xff]  }
 0x186   :  { %2238 = vmatprep.subr.bf16.mxu0 %v4055_v18  ;;  %v4101_v18 = vld [vmem:[#allocation7 + $0x110] ss:$8 sps:$4 sm:$0xff]  }
 0x187   :  { %2878 = vmatpush2.bf16.msra.mxu1 %v4062_v20  ;;  %v4143_v20 = vld [vmem:[#allocation7 + $0x230] ss:$8 sps:$4 sm:$0xff]  }
 0x188   :  { %2879 = vmatprep.subr.bf16.mxu1 %v4070_v21  ;;  %v4148_v21 = vld [vmem:[#allocation7 + $0x224] ss:$8 sps:$4 sm:$0xff]  }
 0x189   :  { %2239 = vmatpush2.bf16.msra.mxu0 %v4053_v22  ;;  %v4104_v22 = vld [vmem:[#allocation7 + $0x100] ss:$8 sps:$4 sm:$0xff]  }
 0x18a   :  { %2240 = vmatprep.subr.bf16.mxu0 %v4061_v23  ;;  %v4109_v23 = vld [vmem:[#allocation7 + $0x1f4] ss:$8 sps:$4 sm:$0xff]  }
 0x18b   :  { %2880 = vmatpush2.bf16.msra.mxu1 %v4068_v25  ;;  %v4146_v25 = vld [vmem:[#allocation7 + $0x220] ss:$8 sps:$4 sm:$0xff]  }
 0x18c   :  { %2881 = vmatprep.subr.bf16.mxu1 %v4076_v26  ;;  %v4151_v26 = vld [vmem:[#allocation7 + $0x214] ss:$8 sps:$4 sm:$0xff]  }
 0x18d   :  { %2241 = vmatpush2.bf16.msra.mxu0 %v4059_v27  ;;  %v4107_v27 = vld [vmem:[#allocation7 + $0x1f0] ss:$8 sps:$4 sm:$0xff]  }
 0x18e   :  { %2242 = vmatprep.subr.bf16.mxu0 %v4067_v28  ;;  %v4112_v28 = vld [vmem:[#allocation7 + $0x1e4] ss:$8 sps:$4 sm:$0xff]  }
 0x18f   :  { %2882 = vmatpush2.bf16.msra.mxu1 %v4074_v30  ;;  %v4149_v30 = vld [vmem:[#allocation7 + $0x210] ss:$8 sps:$4 sm:$0xff]  }
 0x190   :  { %2883 = vmatprep.subr.bf16.mxu1 %v4079_v33  ;;  %v4154_v33 = vld [vmem:[#allocation7 + $0x204] ss:$8 sps:$4 sm:$0xff]  }
 0x191   :  { %2243 = vmatpush2.bf16.msra.mxu0 %v4065_v37  ;;  %v4110_v37 = vld [vmem:[#allocation7 + $0x1e0] ss:$8 sps:$4 sm:$0xff]  }
 0x192   :  { %2244 = vmatprep.subr.bf16.mxu0 %v4073_v38  ;;  %v4115_v38 = vld [vmem:[#allocation7 + $0x1d4] ss:$8 sps:$4 sm:$0xff]  }
 0x193   :  { %2884 = vmatpush2.bf16.msra.mxu1 %v4077_v52  ;;  %v4157_v52 = vld [vmem:[#allocation7 + $0x2f4] ss:$8 sps:$4 sm:$0xff]  }
 0x194   :  { %2885 = vmatprep.subr.bf16.mxu1 %v4082_v40  ;;  %v4113_v40 = vld [vmem:[#allocation7 + $0x1d0] ss:$8 sps:$4 sm:$0xff]  }
 0x195   :  { %2245 = vmatpush2.bf16.msra.mxu0 %v4071_v41  ;;  %v4155_v41 = vld [vmem:[#allocation7 + $0x2f0] ss:$8 sps:$4 sm:$0xff]  }
 0x196   :  { %2896 = vmatprep.subr.bf16.mxu0 %v4085_v42  ;;  %v4160_v42 = vld [vmem:[#allocation7 + $0x2e4] ss:$8 sps:$4 sm:$0xff]  }
 0x197   :  { %2886 = vmatpush2.bf16.msra.mxu1 %v4080_v10  ;;  %v4121_v10 = vld [vmem:[#allocation7 + $0x1b4] ss:$8 sps:$4 sm:$0xff]  }
 0x198   :  { %v2002_v49 = vpop.f32.mrf.mxu0  ;;  %2247 = vmatmul.mubr.bf16.vlgmr.msra.gmra.mxu0 %v4433_v16  ;;  %v4094_v16 = vld [vmem:[#allocation7 + $0x144] ss:$8 sps:$4 sm:$0xff]   ;;  %2937 = vmatprep.subr.bf16.mxu1 %v4133_v61 }
 0x199   :  { %v2003_v51 = vadd.f32 %v2002_v49, %v1962_v47  ;;  %2897 = vmatpush1.bf16.msra.mxu0 %v4083_v45  ;;  %v4163_v45 = vld [vmem:[#allocation7 + $0x2d4] ss:$8 sps:$4 sm:$0xff]   ;;  %v4124_v47 = vld [vmem:[#allocation7 + $0x1a4] ss:$8 sps:$4 sm:$0xff]   ;;  %v4161_v49 = vld [vmem:[#allocation7 + $0x2d0] ss:$8 sps:$4 sm:$0xff]  }
 0x19a   :  { %v2004_v53 = vpop.f32.mrf.mxu0  ;;  %2898 = vmatprep.subr.bf16.mxu0 %v4088_v46  ;;  %v4471_v55 = vpop.f32.mrf.mxu1  ;;  %v4119_v46 = vld [vmem:[#allocation7 + $0x1b0] ss:$8 sps:$4 sm:$0xff]  }
 0x19b   :  { %v2005_v34 = vadd.f32 %v2004_v53, %v1964_v50  ;;  %v2255_v56 = vmax.f32 %v2003_v51, 0.0  ;;  %v4166_v50 = vld [vmem:[#allocation7 + $0x2c4] ss:$8 sps:$4 sm:$0xff]   ;;  %v4122_v51 = vld [vmem:[#allocation7 + $0x1a0] ss:$8 sps:$4 sm:$0xff]  }
 0x19c   :  { %v2006_v57 = vpop.f32.mrf.mxu0  ;;  %v4473_v58 = vpop.f32.mrf.mxu1  ;;  %v4164_v53 = vld [vmem:[#allocation7 + $0x2c0] ss:$8 sps:$4 sm:$0xff]  }
 0x19d   :  { %v2256_v35 = vmax.f32 %v2005_v34, 0.0  ;;  %2899 = vmatpush1.bf16.msra.mxu0 %v4086_v31  ;;  %v2261_v0 = vpack.c.bf16 %v2255_v56, %v2255_v56  ;;  %v4127_v31 = vld [vmem:[#allocation7 + $0x194] ss:$8 sps:$4 sm:$0xff]   ;;  %v426_v34 = vsub.s32 2, %v4454_v24  ;;  %v4125_v56 = vld [vmem:[#allocation7 + $0x190] ss:$8 sps:$4 sm:$0xff]  }
 0x19e   :  { %v2007_v60 = vpop.f32.mrf.mxu0  ;;  %2900 = vmatprep.subr.bf16.mxu0 %v4091_v54  ;;  %v2047_v39 = vpop.f32.mrf.mxu1  ;;  %v4169_v54 = vld [vmem:[#allocation7 + $0x2b4] ss:$8 sps:$4 sm:$0xff]   ;;  %v4130_v57 = vld [vmem:[#allocation7 + $0x184] ss:$8 sps:$4 sm:$0xff]  }
 0x19f   :  { %v2262_v62 = vpack.c.bf16 %v2256_v35, %v2256_v35  ;;  %v430_v35 = vsub.s32 3, %v4454_v24  ;;  %v4172_v60 = vld [vmem:[#allocation7 + $0x2a4] ss:$8 sps:$4 sm:$0xff]   ;;  %v4128_v39 = vld [vmem:[#allocation7 + $0x180] ss:$8 sps:$4 sm:$0xff]  }
 0x1a0   :  { %v2048_v1 = vpop.f32.mrf.mxu1 }
 0x1a1   :  { %2887 = vmatprep.mubr.bf16.mxu1 %v2262_v62  ;;  %2901 = vmatpush1.bf16.msra.mxu0 %v4089_v59  ;;  %v4167_v59 = vld [vmem:[#allocation7 + $0x2b0] ss:$8 sps:$4 sm:$0xff]   ;;  %v431_v61 = vrot.slane %v4457_v32, %v430_v35  ;;  %v4170_v62 = vld [vmem:[#allocation7 + $0x2a0] ss:$8 sps:$4 sm:$0xff]  }
 0x1a2   :  { %2888 = vmatmul.mubr.bf16.vlgmr.msra.gmra.mxu1 %v2261_v0  ;;  %2902 = vmatprep.subr.bf16.mxu0 %v4094_v16  ;;  %v427_v16 = vrot.slane %v4457_v32, %v426_v34 }
 0x1a3   :  { %2938 = vmatpush1.bf16.msra.mxu1 %v4131_v63  ;;  %v2046_v0 = vadd.f32 %v4473_v58, %v431_v61 }
 0x1a4   :  { %2939 = vmatprep.subr.bf16.mxu1 %v4136_v2  ;;  %v2044_v63 = vadd.f32 %v4471_v55, %v427_v16  ;;  %v4175_v2 = vld [vmem:[#allocation7 + $0x294] ss:$8 sps:$4 sm:$0xff]  }
 0x1a5   :  { %2903 = vmatpush1.bf16.msra.mxu0 %v4092_v3 }
 0x1a6   :  { %2904 = vmatprep.subr.bf16.mxu0 %v4097_v4  ;;  %v4173_v4 = vld [vmem:[#allocation7 + $0x290] ss:$8 sps:$4 sm:$0xff]  }
 0x1a7   :  { %2940 = vmatpush1.bf16.msra.mxu1 %v4134_v5 }
 0x1a8   :  { %2941 = vmatprep.subr.bf16.mxu1 %v4139_v6 }
 0x1a9   :  { %2905 = vmatpush1.bf16.msra.mxu0 %v4095_v8 }
 0x1aa   :  { %2906 = vmatprep.subr.bf16.mxu0 %v4100_v9 }
 0x1ab   :  { %2942 = vmatpush1.bf16.msra.mxu1 %v4137_v11 }
 0x1ac   :  { %2943 = vmatprep.subr.bf16.mxu1 %v4142_v12 }
 0x1ad   :  { %2907 = vmatpush1.bf16.msra.mxu0 %v4098_v13  ;;  %v4178_v13 = vld [vmem:[#allocation7 + $0x284] ss:$8 sps:$4 sm:$0xff]  }
 0x1ae   :  { %2908 = vmatprep.subr.bf16.mxu0 %v4103_v14 }
 0x1af   :  { %2944 = vmatpush1.bf16.msra.mxu1 %v4140_v15  ;;  %v4176_v15 = vld [vmem:[#allocation7 + $0x280] ss:$8 sps:$4 sm:$0xff]  }
 0x1b0   :  { %2945 = vmatprep.subr.bf16.mxu1 %v4145_v17 }
 0x1b1   :  { %2909 = vmatpush1.bf16.msra.mxu0 %v4101_v18 }
 0x1b2   :  { %2910 = vmatprep.subr.bf16.mxu0 %v4106_v19 }
 0x1b3   :  { %2946 = vmatpush1.bf16.msra.mxu1 %v4143_v20 }
 0x1b4   :  { %2947 = vmatprep.subr.bf16.mxu1 %v4148_v21 }
 0x1b5   :  { %2911 = vmatpush1.bf16.msra.mxu0 %v4104_v22 }
 0x1b6   :  { %2912 = vmatprep.subr.bf16.mxu0 %v4109_v23 }
 0x1b7   :  { %2948 = vmatpush1.bf16.msra.mxu1 %v4146_v25 }
 0x1b8   :  { %2949 = vmatprep.subr.bf16.mxu1 %v4151_v26 }
 0x1b9   :  { %2913 = vmatpush2.bf16.msra.mxu0 %v4107_v27 }
 0x1ba   :  { %2914 = vmatprep.subr.bf16.mxu0 %v4112_v28 }
 0x1bb   :  { %2950 = vmatpush1.bf16.msra.mxu1 %v4149_v30 }
 0x1bc   :  { %2951 = vmatprep.subr.bf16.mxu1 %v4154_v33 }
 0x1bd   :  { %2915 = vmatpush2.bf16.msra.mxu0 %v4110_v37  ;;  %v4179_v37 = vld [vmem:[#allocation10 + $0x78] sm:$0xff]  }
 0x1be   :  { %2916 = vmatprep.subr.bf16.mxu0 %v4115_v38  ;;  %v4180_v38 = vld [vmem:[#allocation10 + $0x38] sm:$0xff]  }
 0x1bf   :  { %2952 = vmatpush1.bf16.msra.mxu1 %v4152_v7  ;;  %v4181_v7 = vld [vmem:[#allocation10 + $0x70] sm:$0xff]  }
 0x1c0   :  { %2953 = vmatprep.subr.bf16.mxu1 %v4157_v52  ;;  %v4182_v52 = vld [vmem:[#allocation10 + $0x30] sm:$0xff]  }
 0x1c1   :  { %2917 = vmatpush2.bf16.msra.mxu0 %v4113_v40  ;;  %v4183_v40 = vld [vmem:[#allocation10 + $0x68] sm:$0xff]  }
 0x1c2   :  { %2918 = vmatprep.subr.bf16.mxu0 %v4118_v36  ;;  %v4184_v36 = vld [vmem:[#allocation10 + $0x28] sm:$0xff]  }
 0x1c3   :  { %2954 = vmatpush2.bf16.msra.mxu1 %v4155_v41  ;;  %v4185_v41 = vld [vmem:[#allocation10 + $0x60] sm:$0xff]  }
 0x1c4   :  { %2955 = vmatprep.subr.bf16.mxu1 %v4160_v42  ;;  %v4186_v42 = vld [vmem:[#allocation10 + $0x20] sm:$0xff]  }
 0x1c5   :  { %2919 = vmatpush2.bf16.msra.mxu0 %v4116_v43  ;;  %v4187_v43 = vld [vmem:[#allocation10 + $0x58] sm:$0xff]  }
 0x1c6   :  { %2920 = vmatprep.subr.bf16.mxu0 %v4121_v10  ;;  %v4188_v10 = vld [vmem:[#allocation10 + $0x18] sm:$0xff]  }
 0x1c7   :  { %2956 = vmatpush2.bf16.msra.mxu1 %v4158_v44  ;;  %v4189_v44 = vld [vmem:[#allocation10 + $0x50] sm:$0xff]  }
 0x1c8   :  { %2957 = vmatprep.subr.bf16.mxu1 %v4163_v45  ;;  %v4190_v45 = vld [vmem:[#allocation10 + $0x10] sm:$0xff]  }
 0x1c9   :  { %2921 = vmatpush2.bf16.msra.mxu0 %v4119_v46  ;;  %v434_v46 = vsub.s32 4, %v4454_v24 }
 0x1ca   :  { %2922 = vmatprep.subr.bf16.mxu0 %v4124_v47  ;;  %v438_v47 = vsub.s32 5, %v4454_v24 }
 0x1cb   :  { %2958 = vmatpush2.bf16.msra.mxu1 %v4161_v49  ;;  %v435_v49 = vrot.slane %v4457_v32, %v434_v46 }
 0x1cc   :  { %2959 = vmatprep.subr.bf16.mxu1 %v4166_v50  ;;  %v439_v50 = vrot.slane %v4457_v32, %v438_v47 }
 0x1cd   :  { %2923 = vmatpush2.bf16.msra.mxu0 %v4122_v51 }
 0x1ce   :  { %2924 = vmatprep.subr.bf16.mxu0 %v4127_v31 }
 0x1cf   :  { %2960 = vmatpush2.bf16.msra.mxu1 %v4164_v53 }
 0x1d0   :  { %2961 = vmatprep.subr.bf16.mxu1 %v4169_v54 }
 0x1d1   :  { %2925 = vmatpush2.bf16.msra.mxu0 %v4125_v56 }
 0x1d2   :  { %2926 = vmatprep.subr.bf16.mxu0 %v4130_v57 }
 0x1d3   :  { %2962 = vmatpush2.bf16.msra.mxu1 %v4167_v59 }
 0x1d4   :  { %2963 = vmatprep.subr.bf16.mxu1 %v4172_v60 }
 0x1d5   :  { %2927 = vmatpush2.bf16.msra.mxu0 %v4128_v39 }
 0x1d6   :  { %3568 = vmatprep.subr.bf16.mxu0 %v4179_v37 }
 0x1d7   :  { %2964 = vmatpush2.bf16.msra.mxu1 %v4170_v62 }
 0x1d8   :  { %v2084_v1 = vpop.f32.mrf.mxu0  ;;  %2965 = vmatprep.subr.bf16.mxu1 %v4175_v2  ;;  %v2363_v2 = vld [vmem:[#allocation9] sm:$0x3] }
 0x1d9   :  { %v2085_v3 = vadd.f32 %v2084_v1, %v2044_v63 }
 0x1da   :  { %v2086_v5 = vpop.f32.mrf.mxu0  ;;  %v2125_v6 = vpop.f32.mrf.mxu1 }
 0x1db   :  { %v2087_v8 = vadd.f32 %v2086_v5, %v2046_v0  ;;  %v2126_v9 = vadd.f32 %v2125_v6, %v2085_v3  ;;  %2966 = vmatpush2.bf16.msra.mxu1 %v4173_v4  ;;  %v2368_v3 = vrot.slane %v2363_v2, %v418_v29  ;;  %v2372_v4 = vrot.slane %v2363_v2, %v422_v48  ;;  %v4191_v5 = vld [vmem:[#allocation10 + $0x48] sm:$0xff]  }
 0x1dc   :  { %v2088_v11 = vpop.f32.mrf.mxu0  ;;  %v2127_v12 = vpop.f32.mrf.mxu1  ;;  %2967 = vmatprep.subr.bf16.mxu1 %v4178_v13 }
 0x1dd   :  { %v2128_v14 = vadd.f32 %v2127_v12, %v2087_v8  ;;  %v2257_v55 = vmax.f32 %v2126_v9, 0.0  ;;  %v4192_v8 = vld [vmem:[#allocation10 + $0x8] sm:$0xff]  }
 0x1de   :  { %v2089_v17 = vpop.f32.mrf.mxu0  ;;  %v2129_v18 = vpop.f32.mrf.mxu1 }
 0x1df   :  { %v2258_v58 = vmax.f32 %v2128_v14, 0.0  ;;  %2968 = vmatpush2.bf16.msra.mxu1 %v4176_v15  ;;  %v2263_v21 = vpack.c.bf16 %v2257_v55, %v2257_v55  ;;  %v4193_v14 = vld [vmem:[#allocation10 + $0x40] sm:$0xff]  }
 0x1e0   :  { %v2130_v19 = vpop.f32.mrf.mxu1  ;;  %v4194_v55 = vld [vmem:[#allocation10] sm:$0xff]  }
 0x1e1   :  { %v2264_v20 = vpack.c.bf16 %v2258_v58, %v2258_v58 }
 0x1e3   :  { %2928 = vmatprep.mubr.bf16.mxu0 %v2264_v20 }
 0x1e4   :  { %2929 = vmatmul.mubr.bf16.vlgmr.msra.gmra.mxu0 %v2263_v21 }
 0x1e5   :  { %3569 = vmatpush3.bf16.msra.mxu0 %v4180_v38 }
 0x1e6   :  { %3570 = vmatprep.subr.bf16.mxu0 %v4181_v7 }
 0x1e9   :  { %3571 = vmatpush3.bf16.msra.mxu0 %v4182_v52 }
 0x1ea   :  { %3572 = vmatprep.subr.bf16.mxu0 %v4183_v40 }
 0x1ed   :  { %3573 = vmatpush3.bf16.msra.mxu0 %v4184_v36 }
 0x1ee   :  { %3574 = vmatprep.subr.bf16.mxu0 %v4185_v41 }
 0x1f1   :  { %3575 = vmatpush3.bf16.msra.mxu0 %v4186_v42 }
 0x1f2   :  { %3576 = vmatprep.subr.bf16.mxu0 %v4187_v43 }
 0x1f5   :  { %3577 = vmatpush3.bf16.msra.mxu0 %v4188_v10 }
 0x1f6   :  { %3578 = vmatprep.subr.bf16.mxu0 %v4189_v44 }
 0x1f9   :  { %3579 = vmatpush3.bf16.msra.mxu0 %v4190_v45 }
 0x1fa   :  { %3580 = vmatprep.subr.bf16.mxu0 %v4191_v5 }
 0x1fd   :  { %3581 = vmatpush3.bf16.msra.mxu0 %v4192_v8 }
 0x1fe   :  { %3582 = vmatprep.subr.bf16.mxu0 %v4193_v14 }
 0x201   :  { %3583 = vmatpush3.bf16.msra.mxu0 %v4194_v55 }
 0x218   :  { %v2166_v22 = vpop.f32.mrf.mxu0 }
 0x219   :  { %v2167_v51 = vadd.f32 %v2166_v22, %v435_v49 }
 0x21a   :  { %v2168_v23 = vpop.f32.mrf.mxu0  ;;  %v2207_v25 = vpop.f32.mrf.mxu1 }
 0x21b   :  { %v2169_v31 = vadd.f32 %v2168_v23, %v439_v50  ;;  %v2208_v53 = vadd.f32 %v2207_v25, %v2167_v51 }
 0x21c   :  { %v2170_v26 = vpop.f32.mrf.mxu0  ;;  %v2209_v27 = vpop.f32.mrf.mxu1 }
 0x21d   :  { %v2210_v34 = vadd.f32 %v2209_v27, %v2169_v31  ;;  %v3551_v27 = vld [vmem:[#allocation12] ss:$0 sm:$0xff] }
 0x21e   :  { %v2171_v28 = vpop.f32.mrf.mxu0  ;;  %v2211_v30 = vpop.f32.mrf.mxu1 }
 0x220   :  { %v2212_v33 = vpop.f32.mrf.mxu1 }
 0x258   :  { %v2248_v54 = vpop.f32.mrf.mxu0 }
 0x259   :  { %v2249_v56 = vadd.f32 %v2248_v54, %v2208_v53 }
 0x25a   :  { %v2250_v57 = vpop.f32.mrf.mxu0 }
 0x25b   :  { %v2251_v35 = vadd.f32 %v2250_v57, %v2210_v34  ;;  %v2259_v59 = vmax.f32 %v2249_v56, 0.0 }
 0x25c   :  { %v2252_v60 = vpop.f32.mrf.mxu0 }
 0x25d   :  { %v2260_v16 = vmax.f32 %v2251_v35, 0.0  ;;  %v2265_v62 = vpack.c.bf16 %v2259_v59, %v2259_v59 }
 0x25e   :  { %v2253_v39 = vpop.f32.mrf.mxu0 }
 0x25f   :  { %v2266_v61 = vpack.c.bf16 %v2260_v16, %v2260_v16 }
 0x261   :  { %2969 = vmatprep.mubr.bf16.mxu1 %v2266_v61 }
 0x262   :  { %v2889_v63 = vpop.f32.mrf.mxu1  ;;  %2970 = vmatmul.mubr.bf16.vlgmr.msra.gmra.mxu1 %v2265_v62 }
 0x263   :  { %v2890_v6 = vadd.f32 %v2889_v63, %v2368_v3 }
 0x264   :  { %v2891_v0 = vpop.f32.mrf.mxu1 }
 0x265   :  { %v2892_v11 = vadd.f32 %v2891_v0, %v2372_v4 }
 0x266   :  { %v2893_v1 = vpop.f32.mrf.mxu1 }
 0x268   :  { %v2894_v32 = vpop.f32.mrf.mxu1 }
 0x2a4   :  { %v2930_v9 = vpop.f32.mrf.mxu0 }
 0x2a5   :  { %v2931_v12 = vadd.f32 %v2930_v9, %v2890_v6 }
 0x2a6   :  { %v2932_v13 = vpop.f32.mrf.mxu0 }
 0x2a7   :  { %v2933_v15 = vadd.f32 %v2932_v13, %v2892_v11 }
 0x2a8   :  { %v2934_v17 = vpop.f32.mrf.mxu0 }
 0x2aa   :  { %v2935_v18 = vpop.f32.mrf.mxu0 }
 0x322   :  { %v2971_v29 = vpop.f32.mrf.mxu1 }
 0x323   :  { %v2972_v58 = vadd.f32 %v2971_v29, %v2931_v12 }
 0x324   :  { %v2973_v24 = vpop.f32.mrf.mxu1 }
 0x325   :  { %v2974_v48 = vadd.f32 %v2973_v24, %v2933_v15  ;;  %v2978_v19 = vmax.f32 %v2972_v58, 0.0 }
 0x326   :  { %v2975_v20 = vpop.f32.mrf.mxu1 }
 0x327   :  { %v2979_v21 = vmax.f32 %v2974_v48, 0.0  ;;  %v2980_v25 = vpack.c.bf16 %v2978_v19, %v2978_v19 }
 0x328   :  { %v2976_v22 = vpop.f32.mrf.mxu1 }
 0x329   :  { %v2981_v23 = vpack.c.bf16 %v2979_v21, %v2979_v21 }
 0x32b   :  { %3149 = vmatprep.mubr.bf16.mxu0 %v2981_v23 }
 0x32c   :  { %3150 = vmatmul.mubr.bf16.vlgmr.msra.gmra.mxu0 %v2980_v25 }
 0x3ec   :  { %v3584_v26 = vpop.f32.mrf.mxu0 }
 0x3ee   :  { %v3585_v28 = vpop.f32.mrf.mxu0 }
 0x3ef   :  { %v3586_v30 = vadd.f32 %v3585_v28, %v3584_v26 }
 0x3f0   :  { %v3587_v33 = vpop.f32.mrf.mxu0 }
 0x3f1   :  { %v3152_v37 = vadd.f32 %v3586_v30, %v3551_v27 }
 0x3f2   :  { %v3588_v38 = vpop.f32.mrf.mxu0 }
 0x3f3   :  { %3158 = vst.msk [vmem:[%s4499_s7] sm:$0xff] %vm3157_vm0, %v3152_v37 }
 0x3f4   :  { %3163 = vsyncpa [#allocation3], 1 }
 0x3f5   :  { %3164 = vsyncpa [#allocation5], 1 }
 0x3f6   :  { %3165 = vsyncpa [#allocation8], 1 }
 0x3f7   :  { %3166 = vsyncpa [#allocation11], 1 }

</bundles_post_ra>
